<compile_context>
chip_gen: v7x
topology: tpu7x:2x2x1
jax: 0.10.0
libtpu: 0.0.40
codegen_flags: <defaults>
</compile_context>

<pallas_src>
import jax
import jax.numpy as jnp
from jax.experimental import pallas as pl
from jax.experimental.pallas import tpu as pltpu


def _num_tensorcores():
    """Best-effort TensorCore-per-chip count (v7x has 2, earlier chips 1)."""
    try:
        kind = jax.devices()[0].device_kind.lower()
        if "v7" in kind:
            return 2
    except Exception:
        pass
    return 1


def _pick_tile(rows, n_cores):
    """One tile per TensorCore when the row count splits into 8-aligned equal
    tiles; otherwise a single full-extent block (always legal w.r.t. the
    (8,128) constraint, and optimal on single-TC chips anyway)."""
    if n_cores > 1 and rows % (8 * n_cores) == 0:
        return rows // n_cores
    # Falls back to grid=(1,): no pipelining / TC-sharding, but this kernel
    # is tiny and HBM-bound so a single block is the cheapest layout.
    return rows


def _make_scale_mul_kernel(tile, rows):
    def kernel(scale_ref, x_ref, o_ref):
        # scale_ref: (rows, 1) resident block; x_ref/o_ref: (tile, HW) tiles.
        if tile == rows:
            s = scale_ref[...]
        else:
            start = pl.multiple_of(pl.program_id(0) * tile, tile)
            s = scale_ref[pl.ds(start, tile), :]
        o_ref[...] = (s * x_ref[...]).astype(o_ref.dtype)
    return kernel


def channel_scale_mul(x252, x247):
    """x252: (N, C, 1, 1), x247: (N, C, H, W) -> (N, C, H, W)."""
    n, c, h, w = x247.shape
    assert x252.shape == (n, c, 1, 1)

    rows = n * c
    hw = h * w

    x_2d = x247.reshape(rows, hw)   # (N*C, HW) lane-dense slab
    s_2d = x252.reshape(rows, 1)    # (N*C, 1) per-channel scale

    tile = _pick_tile(rows, _num_tensorcores())
    grid = (rows // tile,)

    out_2d = pl.pallas_call(
        _make_scale_mul_kernel(tile, rows),
        out_shape=jax.ShapeDtypeStruct((rows, hw), x247.dtype),
        grid=grid,
        in_specs=[
            # Constant block index -> fetched once, stays resident in VMEM.
            pl.BlockSpec((rows, 1), lambda i: (0, 0)),
            pl.BlockSpec((tile, hw), lambda i: (i, 0)),
        ],
        out_specs=pl.BlockSpec((tile, hw), lambda i: (i, 0)),
        compiler_params=pltpu.CompilerParams(
            dimension_semantics=("parallel",)
        ),
    )(s_2d, x_2d)

    return out_2d.reshape(n, c, h, w)


if __name__ == "__main__":
    key = jax.random.PRNGKey(0)
    k1, k2 = jax.random.split(key)

    # Shapes consistent with the module's forward.
    x247 = jax.random.normal(k1, (1, 480, 28, 28), dtype=jnp.float32)
    x252 = jax.random.normal(k2, (1, 480, 1, 1), dtype=jnp.float32)

    out = channel_scale_mul(x252, x247)
    out = jax.block_until_ready(out)

    # Correctness check against plain JAX broadcasting semantics.
    ref = x252 * x247
    assert out.shape == ref.shape
    assert jnp.allclose(out, ref, atol=1e-6, rtol=1e-6)

    print("KERNEL_OK")
</pallas_src>

<mosaic_0001>
module attributes {stable_mosaic.version = 11 : i64} {
  func.func @kernel(%arg0: i32, %arg1: memref<480x1xf32, #tpu.memory_space<vmem>>, %arg2: memref<480x784xf32, #tpu.memory_space<vmem>>, %arg3: memref<480x784xf32, #tpu.memory_space<vmem>>) attributes {dimension_semantics = [#tpu.dimension_semantics<parallel>], iteration_bounds = array<i64: 1>, scalar_prefetch = 0 : i64, scratch_operands = 0 : i64, tpu.core_type = #tpu.core_type<tc>, window_params = [{pipeline_mode = #tpu.pipeline_mode<synchronous>, transform_indices = @transform_0, window_bounds = array<i64: 480, 1>}, {transform_indices = @transform_1, window_bounds = array<i64: 480, 784>}, {transform_indices = @transform_2, window_bounds = array<i64: 480, 784>}]} {
    %c0 = arith.constant 0 : index
    %c0_0 = arith.constant 0 : index
    %0 = vector.load %arg1[%c0, %c0_0] : memref<480x1xf32, #tpu.memory_space<vmem>>, vector<480x1xf32>
    %c0_1 = arith.constant 0 : index
    %c0_2 = arith.constant 0 : index
    %1 = vector.load %arg2[%c0_1, %c0_2] : memref<480x784xf32, #tpu.memory_space<vmem>>, vector<480x784xf32>
    %2 = vector.broadcast %0 : vector<480x1xf32> to vector<480x784xf32>
    %3 = arith.mulf %2, %1 : vector<480x784xf32>
    %c0_3 = arith.constant 0 : index
    %c0_4 = arith.constant 0 : index
    %4 = vector.load %arg3[%c0_3, %c0_4] : memref<480x784xf32, #tpu.memory_space<vmem>>, vector<480x784xf32>
    tpu.vector_store %arg3[%c0_3, %c0_4], %3 {strides = array<i32>} : memref<480x784xf32, #tpu.memory_space<vmem>>, vector<480x784xf32>,
    return
  }
  func.func @transform_0(%arg0: i32) -> (i32, i32) {
    %c0_i32 = arith.constant 0 : i32
    %c0_i32_0 = arith.constant 0 : i32
    %c0_i32_1 = arith.constant 0 : i32
    return %c0_i32, %c0_i32_0 : i32, i32
  }
  func.func @transform_1(%arg0: i32) -> (i32, i32) {
    %c0_i32 = arith.constant 0 : i32
    %c0_i32_0 = arith.constant 0 : i32
    return %arg0, %c0_i32 : i32, i32
  }
  func.func @transform_2(%arg0: i32) -> (i32, i32) {
    %c0_i32 = arith.constant 0 : i32
    %c0_i32_0 = arith.constant 0 : i32
    return %arg0, %c0_i32 : i32, i32
  }
}

</mosaic_0001>

<bundles_post_ra>
// kernel: tpu_custom_call.1
= control target key start
LH: loop header
LB: loop body
LE: loop exit
PB: predicated region body
PF: predicated region fallthrough
CT: control target
= control target key end

     0   :  { %v1639_v0 = vmov 0   ;;  %vm1217_vm0 = vcmask 130048   ;;  %s4415_s0 = inlined_call_operand.vmem [shape: f32[480,1], index: 0, kind: input, shape index: {}]   ;;  %s4416_s1 = inlined_call_operand.vmem [shape: f32[480,784], index: 1, kind: input, shape index: {}]   ;;  %s4417_s2 = inlined_call_operand.vmem [shape: f32[480,784], index: 2, kind: output, shape index: {}]  }
   0x1   :  { %1638 = vset.pattern.permute.xlu1 %v1639_v0  ;;  %1637 = vset.pattern.permute.xlu0 %v1639_v0  ;;  %v13_v1 = vld [vmem:[%s4415_s0 + $0x10] sm:$0xff]  ;;  %v11_v2 = vld [vmem:[%s4415_s0] sm:$0xff]  ;;  %v14_v3 = vld [vmem:[%s4415_s0 + $0x18] sm:$0xff] }
   0x2   :  { %503 = vperm.xlu1 %1638, %v13_v1   ;;  %493 = vperm.xlu0 %1637, %v11_v2   ;;  %v12_v4 = vld [vmem:[%s4415_s0 + $0x8] sm:$0xff]  ;;  %v15_v6 = vld [vmem:[%s4415_s0 + $0x20] sm:$0xff]  ;;  %v18_v7 = vld [vmem:[%s4415_s0 + $0x38] sm:$0xff] }
   0x3   :  { %v16_v5 = vld [vmem:[%s4415_s0 + $0x28] sm:$0xff]  ;;  %v17_v8 = vld [vmem:[%s4415_s0 + $0x30] sm:$0xff]  ;;  %v19_v10 = vld [vmem:[%s4415_s0 + $0x40] sm:$0xff] }
   0x4   :  { %v20_v9 = vld [vmem:[%s4415_s0 + $0x48] sm:$0xff]  ;;  %v22_v11 = vld [vmem:[%s4415_s0 + $0x58] sm:$0xff]  ;;  %v21_v12 = vld [vmem:[%s4415_s0 + $0x50] sm:$0xff] }
   0x5   :  { %v24_v13 = vld [vmem:[%s4415_s0 + $0x68] sm:$0xff]  ;;  %v23_v14 = vld [vmem:[%s4415_s0 + $0x60] sm:$0xff]  ;;  %v26_v15 = vld [vmem:[%s4415_s0 + $0x78] sm:$0xff] }
   0x6   :  { %508 = vperm.xlu1 %1638, %v14_v3   ;;  %498 = vperm.xlu0 %1637, %v12_v4   ;;  %v25_v16 = vld [vmem:[%s4415_s0 + $0x70] sm:$0xff]  ;;  %v28_v17 = vld [vmem:[%s4415_s0 + $0x88] sm:$0xff]  ;;  %v27_v18 = vld [vmem:[%s4415_s0 + $0x80] sm:$0xff] }
   0x7   :  { %v30_v19 = vld [vmem:[%s4415_s0 + $0x98] sm:$0xff]  ;;  %v29_v20 = vld [vmem:[%s4415_s0 + $0x90] sm:$0xff]  ;;  %v32_v21 = vld [vmem:[%s4415_s0 + $0xa8] sm:$0xff] }
   0x8   :  { %v31_v22 = vld [vmem:[%s4415_s0 + $0xa0] sm:$0xff]  ;;  %v34_v23 = vld [vmem:[%s4415_s0 + $0xb8] sm:$0xff]  ;;  %v33_v24 = vld [vmem:[%s4415_s0 + $0xb0] sm:$0xff] }
   0x9   :  { %v36_v25 = vld [vmem:[%s4415_s0 + $0xc8] sm:$0xff]  ;;  %v35_v26 = vld [vmem:[%s4415_s0 + $0xc0] sm:$0xff]  ;;  %v38_v27 = vld [vmem:[%s4415_s0 + $0xd8] sm:$0xff] }
   0xa   :  { %518 = vperm.xlu1 %1638, %v16_v5   ;;  %513 = vperm.xlu0 %1637, %v15_v6   ;;  %v37_v28 = vld [vmem:[%s4415_s0 + $0xd0] sm:$0xff]  ;;  %v40_v29 = vld [vmem:[%s4415_s0 + $0xe8] sm:$0xff]  ;;  %v39_v30 = vld [vmem:[%s4415_s0 + $0xe0] sm:$0xff] }
   0xb   :  { %v42_v31 = vld [vmem:[%s4415_s0 + $0xf8] sm:$0xff]  ;;  %v41_v32 = vld [vmem:[%s4415_s0 + $0xf0] sm:$0xff]  ;;  %v44_v33 = vld [vmem:[%s4415_s0 + $0x108] sm:$0xff] }
   0xc   :  { %v43_v34 = vld [vmem:[%s4415_s0 + $0x100] sm:$0xff]  ;;  %v46_v35 = vld [vmem:[%s4415_s0 + $0x118] sm:$0xff]  ;;  %v45_v36 = vld [vmem:[%s4415_s0 + $0x110] sm:$0xff] }
   0xd   :  { %v48_v37 = vld [vmem:[%s4415_s0 + $0x128] sm:$0xff]  ;;  %v47_v38 = vld [vmem:[%s4415_s0 + $0x120] sm:$0xff]  ;;  %v50_v39 = vld [vmem:[%s4415_s0 + $0x138] sm:$0xff] }
   0xe   :  { %528 = vperm.xlu1 %1638, %v18_v7   ;;  %523 = vperm.xlu0 %1637, %v17_v8   ;;  %v49_v40 = vld [vmem:[%s4415_s0 + $0x130] sm:$0xff]  ;;  %v52_v41 = vld [vmem:[%s4415_s0 + $0x148] sm:$0xff]  ;;  %v51_v42 = vld [vmem:[%s4415_s0 + $0x140] sm:$0xff] }
   0xf   :  { %v54_v43 = vld [vmem:[%s4415_s0 + $0x158] sm:$0xff]  ;;  %v53_v44 = vld [vmem:[%s4415_s0 + $0x150] sm:$0xff]  ;;  %v56_v45 = vld [vmem:[%s4415_s0 + $0x168] sm:$0xff] }
  0x10   :  { %v55_v46 = vld [vmem:[%s4415_s0 + $0x160] sm:$0xff]  ;;  %v58_v47 = vld [vmem:[%s4415_s0 + $0x178] sm:$0xff]  ;;  %v57_v48 = vld [vmem:[%s4415_s0 + $0x170] sm:$0xff] }
  0x11   :  { %v60_v49 = vld [vmem:[%s4415_s0 + $0x188] sm:$0xff]  ;;  %v59_v50 = vld [vmem:[%s4415_s0 + $0x180] sm:$0xff]  ;;  %v62_v51 = vld [vmem:[%s4415_s0 + $0x198] sm:$0xff] }
  0x12   :  { %538 = vperm.xlu1 %1638, %v20_v9   ;;  %533 = vperm.xlu0 %1637, %v19_v10   ;;  %v61_v52 = vld [vmem:[%s4415_s0 + $0x190] sm:$0xff]  ;;  %v64_v53 = vld [vmem:[%s4415_s0 + $0x1a8] sm:$0xff]  ;;  %v63_v54 = vld [vmem:[%s4415_s0 + $0x1a0] sm:$0xff] }
  0x13   :  { %v66_v55 = vld [vmem:[%s4415_s0 + $0x1b8] sm:$0xff]  ;;  %v65_v56 = vld [vmem:[%s4415_s0 + $0x1b0] sm:$0xff]  ;;  %v68_v57 = vld [vmem:[%s4415_s0 + $0x1c8] sm:$0xff] }
  0x14   :  { %v67_v58 = vld [vmem:[%s4415_s0 + $0x1c0] sm:$0xff]  ;;  %v70_v59 = vld [vmem:[%s4415_s0 + $0x1d8] sm:$0xff]  ;;  %v69_v60 = vld [vmem:[%s4415_s0 + $0x1d0] sm:$0xff] }
  0x15   :  { %v85_v61 = vld [vmem:[%s4416_s1 + $0x70] sm:$0xff]  ;;  %v86_v62 = vld [vmem:[%s4416_s1 + $0x78] sm:$0xff]  ;;  %v87_v63 = vld [vmem:[%s4416_s1 + $0x80] sm:$0xff] }
  0x16   :  { %548 = vperm.xlu1 %1638, %v22_v11   ;;  %543 = vperm.xlu0 %1637, %v21_v12   ;;  %v88_v0 = vld [vmem:[%s4416_s1 + $0x88] sm:$0xff]  ;;  %v89_v1 = vld [vmem:[%s4416_s1 + $0x90] sm:$0xff]  ;;  %v90_v2 = vld [vmem:[%s4416_s1 + $0x98] sm:$0xff] }
  0x17   :  { %v91_v3 = vld [vmem:[%s4416_s1 + $0xa0] sm:$0xff]  ;;  %v72_v5 = vld [vmem:[%s4416_s1 + $0x8] sm:$0xff]  ;;  %v73_v6 = vld [vmem:[%s4416_s1 + $0x10] sm:$0xff] }
  0x18   :  { %v71_v4 = vld [vmem:[%s4416_s1] sm:$0xff]  ;;  %v74_v7 = vld [vmem:[%s4416_s1 + $0x18] sm:$0xff]  ;;  %v76_v9 = vld [vmem:[%s4416_s1 + $0x28] sm:$0xff] }
  0x19   :  { %v75_v8 = vld [vmem:[%s4416_s1 + $0x20] sm:$0xff]  ;;  %v77_v10 = vld [vmem:[%s4416_s1 + $0x30] sm:$0xff] }
  0x1a   :  { %558 = vperm.xlu1 %1638, %v24_v13   ;;  %553 = vperm.xlu0 %1637, %v23_v14   ;;  %v92_v13 = vld [vmem:[%s4416_s1 + $0xa8] sm:$0xff]  ;;  %v93_v14 = vld [vmem:[%s4416_s1 + $0xb0] sm:$0xff] }
  0x1e   :  { %568 = vperm.xlu1 %1638, %v26_v15   ;;  %563 = vperm.xlu0 %1637, %v25_v16   ;;  %v94_v15 = vld [vmem:[%s4416_s1 + $0xb8] sm:$0xff]  ;;  %v95_v16 = vld [vmem:[%s4416_s1 + $0xc0] sm:$0xff] }
  0x22   :  { %578 = vperm.xlu1 %1638, %v28_v17   ;;  %573 = vperm.xlu0 %1637, %v27_v18  }
  0x26   :  { %588 = vperm.xlu1 %1638, %v30_v19   ;;  %583 = vperm.xlu0 %1637, %v29_v20  }
  0x2a   :  { %598 = vperm.xlu1 %1638, %v32_v21   ;;  %593 = vperm.xlu0 %1637, %v31_v22   ;;  %v96_v21 = vld [vmem:[%s4416_s1 + $0xc8] sm:$0xff]  ;;  %v97_v22 = vld [vmem:[%s4416_s1 + $0xd0] sm:$0xff] }
  0x2e   :  { %608 = vperm.xlu1 %1638, %v34_v23   ;;  %603 = vperm.xlu0 %1637, %v33_v24   ;;  %v98_v23 = vld [vmem:[%s4416_s1 + $0xd8] sm:$0xff] }
  0x2f   :  { %v78_v24 = vld [vmem:[%s4416_s1 + $0x38] sm:$0xff] }
  0x32   :  { %618 = vperm.xlu1 %1638, %v36_v25   ;;  %613 = vperm.xlu0 %1637, %v35_v26  }
  0x36   :  { %628 = vperm.xlu1 %1638, %v38_v27   ;;  %623 = vperm.xlu0 %1637, %v37_v28  }
  0x3a   :  { %638 = vperm.xlu1 %1638, %v40_v29   ;;  %633 = vperm.xlu0 %1637, %v39_v30   ;;  %v79_v29 = vld [vmem:[%s4416_s1 + $0x40] sm:$0xff]  ;;  %v80_v30 = vld [vmem:[%s4416_s1 + $0x48] sm:$0xff] }
  0x3e   :  { %648 = vperm.xlu1 %1638, %v42_v31   ;;  %643 = vperm.xlu0 %1637, %v41_v32   ;;  %v81_v31 = vld [vmem:[%s4416_s1 + $0x50] sm:$0xff] }
  0x42   :  { %658 = vperm.xlu1 %1638, %v44_v33   ;;  %653 = vperm.xlu0 %1637, %v43_v34  }
  0x46   :  { %668 = vperm.xlu1 %1638, %v46_v35   ;;  %663 = vperm.xlu0 %1637, %v45_v36   ;;  %v82_v36 = vld [vmem:[%s4416_s1 + $0x58] sm:$0xff] }
  0x4a   :  { %678 = vperm.xlu1 %1638, %v48_v37   ;;  %673 = vperm.xlu0 %1637, %v47_v38   ;;  %v83_v37 = vld [vmem:[%s4416_s1 + $0x60] sm:$0xff]  ;;  %v84_v38 = vld [vmem:[%s4416_s1 + $0x68] sm:$0xff] }
  0x4e   :  { %688 = vperm.xlu1 %1638, %v50_v39   ;;  %683 = vperm.xlu0 %1637, %v49_v40  }
  0x52   :  { %698 = vperm.xlu1 %1638, %v52_v41   ;;  %693 = vperm.xlu0 %1637, %v51_v42  }
  0x56   :  { %708 = vperm.xlu1 %1638, %v54_v43   ;;  %703 = vperm.xlu0 %1637, %v53_v44   ;;  %v106_v43 = vld [vmem:[%s4416_s1 + $0x118] sm:$0xff]  ;;  %v107_v44 = vld [vmem:[%s4416_s1 + $0x120] sm:$0xff] }
  0x5a   :  { %718 = vperm.xlu1 %1638, %v56_v45   ;;  %713 = vperm.xlu0 %1637, %v55_v46   ;;  %v108_v45 = vld [vmem:[%s4416_s1 + $0x128] sm:$0xff]  ;;  %v109_v46 = vld [vmem:[%s4416_s1 + $0x130] sm:$0xff] }
  0x5e   :  { %728 = vperm.xlu1 %1638, %v58_v47   ;;  %723 = vperm.xlu0 %1637, %v57_v48  }
  0x62   :  { %738 = vperm.xlu1 %1638, %v60_v49   ;;  %733 = vperm.xlu0 %1637, %v59_v50  }
  0x66   :  { %748 = vperm.xlu1 %1638, %v62_v51   ;;  %743 = vperm.xlu0 %1637, %v61_v52   ;;  %v110_v51 = vld [vmem:[%s4416_s1 + $0x138] sm:$0xff]  ;;  %v111_v52 = vld [vmem:[%s4416_s1 + $0x140] sm:$0xff] }
  0x6a   :  { %758 = vperm.xlu1 %1638, %v64_v53   ;;  %753 = vperm.xlu0 %1637, %v63_v54   ;;  %v112_v53 = vld [vmem:[%s4416_s1 + $0x148] sm:$0xff]  ;;  %v99_v54 = vld [vmem:[%s4416_s1 + $0xe0] sm:$0xff] }
  0x6e   :  { %768 = vperm.xlu1 %1638, %v66_v55   ;;  %763 = vperm.xlu0 %1637, %v65_v56  }
  0x72   :  { %778 = vperm.xlu1 %1638, %v68_v57   ;;  %773 = vperm.xlu0 %1637, %v67_v58  }
  0x76   :  { %788 = vperm.xlu1 %1638, %v70_v59   ;;  %783 = vperm.xlu0 %1637, %v69_v60   ;;  %v100_v59 = vld [vmem:[%s4416_s1 + $0xe8] sm:$0xff]  ;;  %v101_v60 = vld [vmem:[%s4416_s1 + $0xf0] sm:$0xff] }
  0x81   :  { %v504_v11 = vpop.permute.xlu1 %503  ;;  %v494_v12 = vpop.permute.xlu0 %493 }
  0x82   :  { %v805_v17 = vmul.f32 %v504_v11, %v85_v61  ;;  %v806_v18 = vmul.f32 %v504_v11, %v86_v62  ;;  %v807_v19 = vmul.f32 %v504_v11, %v87_v63  ;;  %v808_v20 = vmul.f32 %v504_v11, %v88_v0  ;;  %v102_v61 = vld [vmem:[%s4416_s1 + $0xf8] sm:$0xff] }
  0x83   :  { %v809_v25 = vmul.f32 %v504_v11, %v89_v1  ;;  %v810_v26 = vmul.f32 %v504_v11, %v90_v2  ;;  %v811_v27 = vmul.f32 %v504_v11, %v91_v3  ;;  %v791_v28 = vmul.f32 %v494_v12, %v71_v4  ;;  %v103_v2 = vld [vmem:[%s4416_s1 + $0x100] sm:$0xff]  ;;  %v104_v3 = vld [vmem:[%s4416_s1 + $0x108] sm:$0xff]  ;;  %v105_v4 = vld [vmem:[%s4416_s1 + $0x110] sm:$0xff] }
  0x84   :  { %1226 = vst [vmem:[%s4417_s2 + $0x70] sm:$0xff] %v805_v17  ;;  %1227 = vst [vmem:[%s4417_s2 + $0x78] sm:$0xff] %v806_v18  ;;  %v792_v32 = vmul.f32 %v494_v12, %v72_v5  ;;  %v793_v33 = vmul.f32 %v494_v12, %v73_v6  ;;  %v794_v34 = vmul.f32 %v494_v12, %v74_v7  ;;  %v122_v11 = vld [vmem:[%s4416_s1 + $0x198] sm:$0xff]  ;;  %v124_v17 = vld [vmem:[%s4416_s1 + $0x1a8] sm:$0xff] }
  0x85   :  { %1228 = vst [vmem:[%s4417_s2 + $0x80] sm:$0xff] %v807_v19  ;;  %1229 = vst [vmem:[%s4417_s2 + $0x88] sm:$0xff] %v808_v20  ;;  %v795_v35 = vmul.f32 %v494_v12, %v75_v8  ;;  %v796_v39 = vmul.f32 %v494_v12, %v76_v9  ;;  %v797_v40 = vmul.f32 %v494_v12, %v77_v10  ;;  %v509_v41 = vpop.permute.xlu1 %508  ;;  %v499_v42 = vpop.permute.xlu0 %498  ;;  %v120_v9 = vld [vmem:[%s4416_s1 + $0x188] sm:$0xff]  ;;  %v121_v10 = vld [vmem:[%s4416_s1 + $0x190] sm:$0xff] }
  0x86   :  { %1230 = vst [vmem:[%s4417_s2 + $0x90] sm:$0xff] %v809_v25  ;;  %1231 = vst [vmem:[%s4417_s2 + $0x98] sm:$0xff] %v810_v26  ;;  %v812_v47 = vmul.f32 %v509_v41, %v92_v13  ;;  %v813_v48 = vmul.f32 %v509_v41, %v93_v14  ;;  %v814_v49 = vmul.f32 %v509_v41, %v94_v15  ;;  %v123_v12 = vld [vmem:[%s4416_s1 + $0x1a0] sm:$0xff]  ;;  %v125_v18 = vld [vmem:[%s4416_s1 + $0x1b0] sm:$0xff] }
  0x87   :  { %1232 = vst.msk [vmem:[%s4417_s2 + $0xa0] sm:$0xff] %vm1217_vm0, %v811_v27  ;;  %1211 = vst [vmem:[%s4417_s2] sm:$0xff] %v791_v28  ;;  %v815_v50 = vmul.f32 %v509_v41, %v95_v16  ;;  %v816_v55 = vmul.f32 %v509_v41, %v96_v21  ;;  %v817_v56 = vmul.f32 %v509_v41, %v97_v22  ;;  %v126_v19 = vld [vmem:[%s4416_s1 + $0x1b8] sm:$0xff]  ;;  %v113_v20 = vld [vmem:[%s4416_s1 + $0x150] sm:$0xff] }
  0x88   :  { %1212 = vst [vmem:[%s4417_s2 + $0x8] sm:$0xff] %v792_v32  ;;  %1213 = vst [vmem:[%s4417_s2 + $0x10] sm:$0xff] %v793_v33  ;;  %v818_v57 = vmul.f32 %v509_v41, %v98_v23  ;;  %v798_v58 = vmul.f32 %v499_v42, %v78_v24  ;;  %v799_v62 = vmul.f32 %v499_v42, %v79_v29  ;;  %v114_v25 = vld [vmem:[%s4416_s1 + $0x158] sm:$0xff]  ;;  %v115_v26 = vld [vmem:[%s4416_s1 + $0x160] sm:$0xff] }
  0x89   :  { %1214 = vst [vmem:[%s4417_s2 + $0x18] sm:$0xff] %v794_v34  ;;  %1215 = vst [vmem:[%s4417_s2 + $0x20] sm:$0xff] %v795_v35  ;;  %v800_v63 = vmul.f32 %v499_v42, %v80_v30  ;;  %v801_v0 = vmul.f32 %v499_v42, %v81_v31  ;;  %v802_v1 = vmul.f32 %v499_v42, %v82_v36  ;;  %v519_v7 = vpop.permute.xlu1 %518  ;;  %v514_v8 = vpop.permute.xlu0 %513  ;;  %v116_v27 = vld [vmem:[%s4416_s1 + $0x168] sm:$0xff]  ;;  %v117_v32 = vld [vmem:[%s4416_s1 + $0x170] sm:$0xff] }
  0x8a   :  { %1216 = vst [vmem:[%s4417_s2 + $0x28] sm:$0xff] %v796_v39  ;;  %1218 = vst.msk [vmem:[%s4417_s2 + $0x30] sm:$0xff] %vm1217_vm0, %v797_v40  ;;  %v803_v5 = vmul.f32 %v499_v42, %v83_v37  ;;  %v804_v6 = vmul.f32 %v499_v42, %v84_v38  ;;  %v826_v13 = vmul.f32 %v519_v7, %v106_v43  ;;  %v118_v33 = vld [vmem:[%s4416_s1 + $0x178] sm:$0xff]  ;;  %v119_v34 = vld [vmem:[%s4416_s1 + $0x180] sm:$0xff] }
  0x8b   :  { %1233 = vst [vmem:[%s4417_s2 + $0xa8] sm:$0xff] %v812_v47  ;;  %1234 = vst [vmem:[%s4417_s2 + $0xb0] sm:$0xff] %v813_v48  ;;  %v827_v14 = vmul.f32 %v519_v7, %v107_v44  ;;  %v828_v15 = vmul.f32 %v519_v7, %v108_v45  ;;  %v829_v16 = vmul.f32 %v519_v7, %v109_v46  ;;  %v134_v39 = vld [vmem:[%s4416_s1 + $0x1f8] sm:$0xff]  ;;  %v135_v40 = vld [vmem:[%s4416_s1 + $0x200] sm:$0xff] }
  0x8c   :  { %1235 = vst [vmem:[%s4417_s2 + $0xb8] sm:$0xff] %v814_v49  ;;  %1236 = vst [vmem:[%s4417_s2 + $0xc0] sm:$0xff] %v815_v50  ;;  %v830_v21 = vmul.f32 %v519_v7, %v110_v51  ;;  %v831_v22 = vmul.f32 %v519_v7, %v111_v52  ;;  %v832_v23 = vmul.f32 %v519_v7, %v112_v53  ;;  %v136_v41 = vld [vmem:[%s4416_s1 + $0x208] sm:$0xff]  ;;  %v137_v42 = vld [vmem:[%s4416_s1 + $0x210] sm:$0xff] }
  0x8d   :  { %1237 = vst [vmem:[%s4417_s2 + $0xc8] sm:$0xff] %v816_v55  ;;  %1238 = vst [vmem:[%s4417_s2 + $0xd0] sm:$0xff] %v817_v56  ;;  %v819_v24 = vmul.f32 %v514_v8, %v99_v54  ;;  %v820_v28 = vmul.f32 %v514_v8, %v100_v59  ;;  %v821_v29 = vmul.f32 %v514_v8, %v101_v60  ;;  %v529_v37 = vpop.permute.xlu1 %528  ;;  %v524_v38 = vpop.permute.xlu0 %523  ;;  %v138_v47 = vld [vmem:[%s4416_s1 + $0x218] sm:$0xff]  ;;  %v139_v48 = vld [vmem:[%s4416_s1 + $0x220] sm:$0xff] }
  0x8e   :  { %1239 = vst.msk [vmem:[%s4417_s2 + $0xd8] sm:$0xff] %vm1217_vm0, %v818_v57  ;;  %1219 = vst [vmem:[%s4417_s2 + $0x38] sm:$0xff] %v798_v58  ;;  %v822_v30 = vmul.f32 %v514_v8, %v102_v61  ;;  %v823_v31 = vmul.f32 %v514_v8, %v103_v2  ;;  %v824_v35 = vmul.f32 %v514_v8, %v104_v3  ;;  %v140_v49 = vld [vmem:[%s4416_s1 + $0x228] sm:$0xff]  ;;  %v127_v50 = vld [vmem:[%s4416_s1 + $0x1c0] sm:$0xff] }
  0x8f   :  { %1220 = vst [vmem:[%s4417_s2 + $0x40] sm:$0xff] %v799_v62  ;;  %1221 = vst [vmem:[%s4417_s2 + $0x48] sm:$0xff] %v800_v63  ;;  %v825_v36 = vmul.f32 %v514_v8, %v105_v4  ;;  %v840_v43 = vmul.f32 %v529_v37, %v120_v9  ;;  %v841_v44 = vmul.f32 %v529_v37, %v121_v10  ;;  %v128_v55 = vld [vmem:[%s4416_s1 + $0x1c8] sm:$0xff]  ;;  %v129_v56 = vld [vmem:[%s4416_s1 + $0x1d0] sm:$0xff] }
  0x90   :  { %1222 = vst [vmem:[%s4417_s2 + $0x50] sm:$0xff] %v801_v0  ;;  %1223 = vst [vmem:[%s4417_s2 + $0x58] sm:$0xff] %v802_v1  ;;  %v842_v45 = vmul.f32 %v529_v37, %v122_v11  ;;  %v843_v46 = vmul.f32 %v529_v37, %v123_v12  ;;  %v844_v51 = vmul.f32 %v529_v37, %v124_v17  ;;  %v130_v57 = vld [vmem:[%s4416_s1 + $0x1d8] sm:$0xff]  ;;  %v131_v62 = vld [vmem:[%s4416_s1 + $0x1e0] sm:$0xff] }
  0x91   :  { %1224 = vst [vmem:[%s4417_s2 + $0x60] sm:$0xff] %v803_v5  ;;  %1225 = vst.msk [vmem:[%s4417_s2 + $0x68] sm:$0xff] %vm1217_vm0, %v804_v6  ;;  %v845_v52 = vmul.f32 %v529_v37, %v125_v18  ;;  %v846_v53 = vmul.f32 %v529_v37, %v126_v19  ;;  %v833_v54 = vmul.f32 %v524_v38, %v113_v20  ;;  %v132_v63 = vld [vmem:[%s4416_s1 + $0x1e8] sm:$0xff]  ;;  %v133_v0 = vld [vmem:[%s4416_s1 + $0x1f0] sm:$0xff]  ;;  %v539_v3 = vpop.permute.xlu1 %538  ;;  %v534_v4 = vpop.permute.xlu0 %533 }
  0x92   :  { %1247 = vst [vmem:[%s4417_s2 + $0x118] sm:$0xff] %v826_v13  ;;  %1248 = vst [vmem:[%s4417_s2 + $0x120] sm:$0xff] %v827_v14  ;;  %v834_v58 = vmul.f32 %v524_v38, %v114_v25  ;;  %v835_v59 = vmul.f32 %v524_v38, %v115_v26  ;;  %v836_v60 = vmul.f32 %v524_v38, %v116_v27  ;;  %v148_v5 = vld [vmem:[%s4416_s1 + $0x268] sm:$0xff]  ;;  %v149_v6 = vld [vmem:[%s4416_s1 + $0x270] sm:$0xff] }
  0x93   :  { %1249 = vst [vmem:[%s4417_s2 + $0x128] sm:$0xff] %v828_v15  ;;  %1250 = vst [vmem:[%s4417_s2 + $0x130] sm:$0xff] %v829_v16  ;;  %v837_v61 = vmul.f32 %v524_v38, %v117_v32  ;;  %v838_v1 = vmul.f32 %v524_v38, %v118_v33  ;;  %v839_v2 = vmul.f32 %v524_v38, %v119_v34  ;;  %v150_v7 = vld [vmem:[%s4416_s1 + $0x278] sm:$0xff]  ;;  %v151_v8 = vld [vmem:[%s4416_s1 + $0x280] sm:$0xff] }
  0x94   :  { %1251 = vst [vmem:[%s4417_s2 + $0x138] sm:$0xff] %v830_v21  ;;  %1252 = vst [vmem:[%s4417_s2 + $0x140] sm:$0xff] %v831_v22  ;;  %v854_v9 = vmul.f32 %v539_v3, %v134_v39  ;;  %v855_v10 = vmul.f32 %v539_v3, %v135_v40  ;;  %v856_v11 = vmul.f32 %v539_v3, %v136_v41  ;;  %v152_v13 = vld [vmem:[%s4416_s1 + $0x288] sm:$0xff]  ;;  %v153_v14 = vld [vmem:[%s4416_s1 + $0x290] sm:$0xff] }
  0x95   :  { %1253 = vst.msk [vmem:[%s4417_s2 + $0x148] sm:$0xff] %vm1217_vm0, %v832_v23  ;;  %1240 = vst [vmem:[%s4417_s2 + $0xe0] sm:$0xff] %v819_v24  ;;  %v857_v12 = vmul.f32 %v539_v3, %v137_v42  ;;  %v154_v15 = vld [vmem:[%s4416_s1 + $0x298] sm:$0xff]  ;;  %v141_v16 = vld [vmem:[%s4416_s1 + $0x230] sm:$0xff]  ;;  %v858_v17 = vmul.f32 %v539_v3, %v138_v47  ;;  %v859_v18 = vmul.f32 %v539_v3, %v139_v48  ;;  %v549_v33 = vpop.permute.xlu1 %548  ;;  %v544_v34 = vpop.permute.xlu0 %543 }
  0x96   :  { %1241 = vst [vmem:[%s4417_s2 + $0xe8] sm:$0xff] %v820_v28  ;;  %1242 = vst [vmem:[%s4417_s2 + $0xf0] sm:$0xff] %v821_v29  ;;  %v860_v19 = vmul.f32 %v539_v3, %v140_v49  ;;  %v847_v20 = vmul.f32 %v534_v4, %v127_v50  ;;  %v142_v21 = vld [vmem:[%s4416_s1 + $0x238] sm:$0xff]  ;;  %v143_v22 = vld [vmem:[%s4416_s1 + $0x240] sm:$0xff]  ;;  %v848_v24 = vmul.f32 %v534_v4, %v128_v55 }
  0x97   :  { %1243 = vst [vmem:[%s4417_s2 + $0xf8] sm:$0xff] %v822_v30  ;;  %1244 = vst [vmem:[%s4417_s2 + $0x100] sm:$0xff] %v823_v31  ;;  %v144_v23 = vld [vmem:[%s4416_s1 + $0x248] sm:$0xff]  ;;  %v849_v25 = vmul.f32 %v534_v4, %v129_v56  ;;  %v850_v26 = vmul.f32 %v534_v4, %v130_v57  ;;  %v851_v27 = vmul.f32 %v534_v4, %v131_v62  ;;  %v145_v28 = vld [vmem:[%s4416_s1 + $0x250] sm:$0xff] }
  0x98   :  { %1245 = vst [vmem:[%s4417_s2 + $0x108] sm:$0xff] %v824_v35  ;;  %1246 = vst.msk [vmem:[%s4417_s2 + $0x110] sm:$0xff] %vm1217_vm0, %v825_v36  ;;  %v146_v29 = vld [vmem:[%s4416_s1 + $0x258] sm:$0xff]  ;;  %v147_v30 = vld [vmem:[%s4416_s1 + $0x260] sm:$0xff]  ;;  %v852_v31 = vmul.f32 %v534_v4, %v132_v63  ;;  %v853_v32 = vmul.f32 %v534_v4, %v133_v0  ;;  %v868_v39 = vmul.f32 %v549_v33, %v148_v5 }
  0x99   :  { %1261 = vst [vmem:[%s4417_s2 + $0x188] sm:$0xff] %v840_v43  ;;  %1262 = vst [vmem:[%s4417_s2 + $0x190] sm:$0xff] %v841_v44  ;;  %v162_v35 = vld [vmem:[%s4416_s1 + $0x2d8] sm:$0xff]  ;;  %v163_v36 = vld [vmem:[%s4416_s1 + $0x2e0] sm:$0xff]  ;;  %v869_v40 = vmul.f32 %v549_v33, %v149_v6  ;;  %v870_v41 = vmul.f32 %v549_v33, %v150_v7  ;;  %v871_v42 = vmul.f32 %v549_v33, %v151_v8  ;;  %v559_v63 = vpop.permute.xlu1 %558  ;;  %v554_v0 = vpop.permute.xlu0 %553 }
  0x9a   :  { %1263 = vst [vmem:[%s4417_s2 + $0x198] sm:$0xff] %v842_v45  ;;  %1264 = vst [vmem:[%s4417_s2 + $0x1a0] sm:$0xff] %v843_v46  ;;  %v164_v37 = vld [vmem:[%s4416_s1 + $0x2e8] sm:$0xff]  ;;  %v165_v38 = vld [vmem:[%s4416_s1 + $0x2f0] sm:$0xff]  ;;  %v872_v47 = vmul.f32 %v549_v33, %v152_v13  ;;  %v873_v48 = vmul.f32 %v549_v33, %v153_v14  ;;  %v874_v49 = vmul.f32 %v549_v33, %v154_v15 }
  0x9b   :  { %1265 = vst [vmem:[%s4417_s2 + $0x1a8] sm:$0xff] %v844_v51  ;;  %1266 = vst [vmem:[%s4417_s2 + $0x1b0] sm:$0xff] %v845_v52  ;;  %v166_v43 = vld [vmem:[%s4416_s1 + $0x2f8] sm:$0xff]  ;;  %v167_v44 = vld [vmem:[%s4416_s1 + $0x300] sm:$0xff]  ;;  %v861_v50 = vmul.f32 %v544_v34, %v141_v16  ;;  %v863_v55 = vmul.f32 %v544_v34, %v143_v22  ;;  %v864_v56 = vmul.f32 %v544_v34, %v144_v23 }
  0x9c   :  { %1267 = vst.msk [vmem:[%s4417_s2 + $0x1b8] sm:$0xff] %vm1217_vm0, %v846_v53  ;;  %1254 = vst [vmem:[%s4417_s2 + $0x150] sm:$0xff] %v833_v54  ;;  %v168_v45 = vld [vmem:[%s4416_s1 + $0x308] sm:$0xff]  ;;  %v155_v46 = vld [vmem:[%s4416_s1 + $0x2a0] sm:$0xff]  ;;  %v862_v54 = vmul.f32 %v544_v34, %v142_v21  ;;  %v865_v57 = vmul.f32 %v544_v34, %v145_v28  ;;  %v867_v62 = vmul.f32 %v544_v34, %v147_v30 }
  0x9d   :  { %1255 = vst [vmem:[%s4417_s2 + $0x158] sm:$0xff] %v834_v58  ;;  %1256 = vst [vmem:[%s4417_s2 + $0x160] sm:$0xff] %v835_v59  ;;  %v156_v51 = vld [vmem:[%s4416_s1 + $0x2a8] sm:$0xff]  ;;  %v157_v52 = vld [vmem:[%s4416_s1 + $0x2b0] sm:$0xff]  ;;  %v882_v5 = vmul.f32 %v559_v63, %v162_v35  ;;  %v883_v6 = vmul.f32 %v559_v63, %v163_v36  ;;  %v884_v7 = vmul.f32 %v559_v63, %v164_v37  ;;  %v564_v30 = vpop.permute.xlu0 %563 }
  0x9e   :  { %1257 = vst [vmem:[%s4417_s2 + $0x168] sm:$0xff] %v836_v60  ;;  %1258 = vst [vmem:[%s4417_s2 + $0x170] sm:$0xff] %v837_v61  ;;  %v158_v53 = vld [vmem:[%s4416_s1 + $0x2b8] sm:$0xff]  ;;  %v159_v58 = vld [vmem:[%s4416_s1 + $0x2c0] sm:$0xff]  ;;  %v866_v61 = vmul.f32 %v544_v34, %v146_v29  ;;  %v885_v8 = vmul.f32 %v559_v63, %v165_v38  ;;  %v886_v13 = vmul.f32 %v559_v63, %v166_v43  ;;  %v569_v29 = vpop.permute.xlu1 %568 }
  0x9f   :  { %1259 = vst [vmem:[%s4417_s2 + $0x178] sm:$0xff] %v838_v1  ;;  %1260 = vst.msk [vmem:[%s4417_s2 + $0x180] sm:$0xff] %vm1217_vm0, %v839_v2  ;;  %v160_v59 = vld [vmem:[%s4416_s1 + $0x2c8] sm:$0xff]  ;;  %v161_v60 = vld [vmem:[%s4416_s1 + $0x2d0] sm:$0xff]  ;;  %v887_v14 = vmul.f32 %v559_v63, %v167_v44  ;;  %v888_v15 = vmul.f32 %v559_v63, %v168_v45  ;;  %v875_v16 = vmul.f32 %v554_v0, %v155_v46 }
  0xa0   :  { %1275 = vst [vmem:[%s4417_s2 + $0x1f8] sm:$0xff] %v854_v9  ;;  %1276 = vst [vmem:[%s4417_s2 + $0x200] sm:$0xff] %v855_v10  ;;  %v176_v1 = vld [vmem:[%s4416_s1 + $0x348] sm:$0xff]  ;;  %v177_v2 = vld [vmem:[%s4416_s1 + $0x350] sm:$0xff]  ;;  %v877_v21 = vmul.f32 %v554_v0, %v157_v52  ;;  %v878_v22 = vmul.f32 %v554_v0, %v158_v53  ;;  %v879_v23 = vmul.f32 %v554_v0, %v159_v58 }
  0xa1   :  { %1277 = vst [vmem:[%s4417_s2 + $0x208] sm:$0xff] %v856_v11  ;;  %1278 = vst [vmem:[%s4417_s2 + $0x210] sm:$0xff] %v857_v12  ;;  %v178_v3 = vld [vmem:[%s4416_s1 + $0x358] sm:$0xff]  ;;  %v179_v4 = vld [vmem:[%s4416_s1 + $0x360] sm:$0xff]  ;;  %v881_v28 = vmul.f32 %v554_v0, %v161_v60  ;;  %v896_v35 = vmul.f32 %v569_v29, %v176_v1  ;;  %v897_v36 = vmul.f32 %v569_v29, %v177_v2  ;;  %v574_v60 = vpop.permute.xlu0 %573 }
  0xa2   :  { %1279 = vst [vmem:[%s4417_s2 + $0x218] sm:$0xff] %v858_v17  ;;  %1280 = vst [vmem:[%s4417_s2 + $0x220] sm:$0xff] %v859_v18  ;;  %v180_v9 = vld [vmem:[%s4416_s1 + $0x368] sm:$0xff]  ;;  %v181_v10 = vld [vmem:[%s4416_s1 + $0x370] sm:$0xff]  ;;  %v898_v37 = vmul.f32 %v569_v29, %v178_v3  ;;  %v899_v38 = vmul.f32 %v569_v29, %v179_v4 }
  0xa3   :  { %1281 = vst.msk [vmem:[%s4417_s2 + $0x228] sm:$0xff] %vm1217_vm0, %v860_v19  ;;  %1268 = vst [vmem:[%s4417_s2 + $0x1c0] sm:$0xff] %v847_v20  ;;  %v182_v11 = vld [vmem:[%s4416_s1 + $0x378] sm:$0xff]  ;;  %v169_v12 = vld [vmem:[%s4416_s1 + $0x310] sm:$0xff]  ;;  %v876_v20 = vmul.f32 %v554_v0, %v156_v51  ;;  %v900_v43 = vmul.f32 %v569_v29, %v180_v9  ;;  %v901_v44 = vmul.f32 %v569_v29, %v181_v10 }
  0xa4   :  { %1269 = vst [vmem:[%s4417_s2 + $0x1c8] sm:$0xff] %v848_v24  ;;  %1270 = vst [vmem:[%s4417_s2 + $0x1d0] sm:$0xff] %v849_v25  ;;  %v170_v17 = vld [vmem:[%s4416_s1 + $0x318] sm:$0xff]  ;;  %v171_v18 = vld [vmem:[%s4416_s1 + $0x320] sm:$0xff]  ;;  %v902_v45 = vmul.f32 %v569_v29, %v182_v11  ;;  %v889_v46 = vmul.f32 %v564_v30, %v169_v12 }
  0xa5   :  { %1271 = vst [vmem:[%s4417_s2 + $0x1d8] sm:$0xff] %v850_v26  ;;  %1272 = vst [vmem:[%s4417_s2 + $0x1e0] sm:$0xff] %v851_v27  ;;  %v172_v19 = vld [vmem:[%s4416_s1 + $0x328] sm:$0xff]  ;;  %v173_v24 = vld [vmem:[%s4416_s1 + $0x330] sm:$0xff]  ;;  %v880_v27 = vmul.f32 %v554_v0, %v160_v59  ;;  %v891_v51 = vmul.f32 %v564_v30, %v171_v18  ;;  %v579_v59 = vpop.permute.xlu1 %578 }
  0xa6   :  { %1273 = vst [vmem:[%s4417_s2 + $0x1e8] sm:$0xff] %v852_v31  ;;  %1274 = vst.msk [vmem:[%s4417_s2 + $0x1f0] sm:$0xff] %vm1217_vm0, %v853_v32  ;;  %v174_v25 = vld [vmem:[%s4416_s1 + $0x338] sm:$0xff]  ;;  %v175_v26 = vld [vmem:[%s4416_s1 + $0x340] sm:$0xff]  ;;  %v892_v52 = vmul.f32 %v564_v30, %v172_v19  ;;  %v893_v53 = vmul.f32 %v564_v30, %v173_v24 }
  0xa7   :  { %1289 = vst [vmem:[%s4417_s2 + $0x268] sm:$0xff] %v868_v39  ;;  %1290 = vst [vmem:[%s4417_s2 + $0x270] sm:$0xff] %v869_v40  ;;  %v190_v31 = vld [vmem:[%s4416_s1 + $0x3b8] sm:$0xff]  ;;  %v191_v32 = vld [vmem:[%s4416_s1 + $0x3c0] sm:$0xff]  ;;  %v895_v58 = vmul.f32 %v564_v30, %v175_v26  ;;  %v584_v26 = vpop.permute.xlu0 %583 }
  0xa8   :  { %1291 = vst [vmem:[%s4417_s2 + $0x278] sm:$0xff] %v870_v41  ;;  %1292 = vst [vmem:[%s4417_s2 + $0x280] sm:$0xff] %v871_v42  ;;  %v192_v33 = vld [vmem:[%s4416_s1 + $0x3c8] sm:$0xff]  ;;  %v193_v34 = vld [vmem:[%s4416_s1 + $0x3d0] sm:$0xff]  ;;  %v910_v1 = vmul.f32 %v579_v59, %v190_v31  ;;  %v911_v2 = vmul.f32 %v579_v59, %v191_v32 }
  0xa9   :  { %1293 = vst [vmem:[%s4417_s2 + $0x288] sm:$0xff] %v872_v47  ;;  %1294 = vst [vmem:[%s4417_s2 + $0x290] sm:$0xff] %v873_v48  ;;  %v194_v39 = vld [vmem:[%s4416_s1 + $0x3d8] sm:$0xff]  ;;  %v195_v40 = vld [vmem:[%s4416_s1 + $0x3e0] sm:$0xff]  ;;  %v912_v3 = vmul.f32 %v579_v59, %v192_v33  ;;  %v913_v4 = vmul.f32 %v579_v59, %v193_v34 }
  0xaa   :  { %1295 = vst.msk [vmem:[%s4417_s2 + $0x298] sm:$0xff] %vm1217_vm0, %v874_v49  ;;  %1282 = vst [vmem:[%s4417_s2 + $0x230] sm:$0xff] %v861_v50  ;;  %v196_v41 = vld [vmem:[%s4416_s1 + $0x3e8] sm:$0xff]  ;;  %v183_v42 = vld [vmem:[%s4416_s1 + $0x380] sm:$0xff]  ;;  %v890_v50 = vmul.f32 %v564_v30, %v170_v17  ;;  %v914_v9 = vmul.f32 %v579_v59, %v194_v39  ;;  %v915_v10 = vmul.f32 %v579_v59, %v195_v40 }
  0xab   :  { %1283 = vst [vmem:[%s4417_s2 + $0x238] sm:$0xff] %v862_v54  ;;  %1284 = vst [vmem:[%s4417_s2 + $0x240] sm:$0xff] %v863_v55  ;;  %v184_v47 = vld [vmem:[%s4416_s1 + $0x388] sm:$0xff]  ;;  %v185_v48 = vld [vmem:[%s4416_s1 + $0x390] sm:$0xff]  ;;  %v916_v11 = vmul.f32 %v579_v59, %v196_v41  ;;  %v903_v12 = vmul.f32 %v574_v60, %v183_v42 }
  0xac   :  { %1285 = vst [vmem:[%s4417_s2 + $0x248] sm:$0xff] %v864_v56  ;;  %1286 = vst [vmem:[%s4417_s2 + $0x250] sm:$0xff] %v865_v57  ;;  %v186_v49 = vld [vmem:[%s4416_s1 + $0x398] sm:$0xff]  ;;  %v187_v54 = vld [vmem:[%s4416_s1 + $0x3a0] sm:$0xff]  ;;  %v894_v57 = vmul.f32 %v564_v30, %v174_v25  ;;  %v905_v17 = vmul.f32 %v574_v60, %v185_v48  ;;  %v589_v25 = vpop.permute.xlu1 %588 }
  0xad   :  { %1287 = vst [vmem:[%s4417_s2 + $0x258] sm:$0xff] %v866_v61  ;;  %1288 = vst.msk [vmem:[%s4417_s2 + $0x260] sm:$0xff] %vm1217_vm0, %v867_v62  ;;  %v188_v55 = vld [vmem:[%s4416_s1 + $0x3a8] sm:$0xff]  ;;  %v189_v56 = vld [vmem:[%s4416_s1 + $0x3b0] sm:$0xff]  ;;  %v906_v18 = vmul.f32 %v574_v60, %v186_v49  ;;  %v907_v19 = vmul.f32 %v574_v60, %v187_v54 }
  0xae   :  { %1303 = vst [vmem:[%s4417_s2 + $0x2d8] sm:$0xff] %v882_v5  ;;  %1304 = vst [vmem:[%s4417_s2 + $0x2e0] sm:$0xff] %v883_v6  ;;  %v204_v61 = vld [vmem:[%s4416_s1 + $0x428] sm:$0xff]  ;;  %v205_v62 = vld [vmem:[%s4416_s1 + $0x430] sm:$0xff]  ;;  %v909_v24 = vmul.f32 %v574_v60, %v189_v56  ;;  %v594_v56 = vpop.permute.xlu0 %593 }
  0xaf   :  { %1305 = vst [vmem:[%s4417_s2 + $0x2e8] sm:$0xff] %v884_v7  ;;  %1306 = vst [vmem:[%s4417_s2 + $0x2f0] sm:$0xff] %v885_v8  ;;  %v206_v63 = vld [vmem:[%s4416_s1 + $0x438] sm:$0xff]  ;;  %v207_v0 = vld [vmem:[%s4416_s1 + $0x440] sm:$0xff]  ;;  %v924_v31 = vmul.f32 %v589_v25, %v204_v61  ;;  %v925_v32 = vmul.f32 %v589_v25, %v205_v62 }
  0xb0   :  { %1307 = vst [vmem:[%s4417_s2 + $0x2f8] sm:$0xff] %v886_v13  ;;  %1308 = vst [vmem:[%s4417_s2 + $0x300] sm:$0xff] %v887_v14  ;;  %v208_v5 = vld [vmem:[%s4416_s1 + $0x448] sm:$0xff]  ;;  %v209_v6 = vld [vmem:[%s4416_s1 + $0x450] sm:$0xff]  ;;  %v926_v33 = vmul.f32 %v589_v25, %v206_v63  ;;  %v927_v34 = vmul.f32 %v589_v25, %v207_v0 }
  0xb1   :  { %1309 = vst.msk [vmem:[%s4417_s2 + $0x308] sm:$0xff] %vm1217_vm0, %v888_v15  ;;  %1296 = vst [vmem:[%s4417_s2 + $0x2a0] sm:$0xff] %v875_v16  ;;  %v210_v7 = vld [vmem:[%s4416_s1 + $0x458] sm:$0xff]  ;;  %v197_v8 = vld [vmem:[%s4416_s1 + $0x3f0] sm:$0xff]  ;;  %v904_v16 = vmul.f32 %v574_v60, %v184_v47  ;;  %v928_v39 = vmul.f32 %v589_v25, %v208_v5  ;;  %v929_v40 = vmul.f32 %v589_v25, %v209_v6 }
  0xb2   :  { %1297 = vst [vmem:[%s4417_s2 + $0x2a8] sm:$0xff] %v876_v20  ;;  %1298 = vst [vmem:[%s4417_s2 + $0x2b0] sm:$0xff] %v877_v21  ;;  %v198_v13 = vld [vmem:[%s4416_s1 + $0x3f8] sm:$0xff]  ;;  %v199_v14 = vld [vmem:[%s4416_s1 + $0x400] sm:$0xff]  ;;  %v930_v41 = vmul.f32 %v589_v25, %v210_v7  ;;  %v917_v42 = vmul.f32 %v584_v26, %v197_v8 }
  0xb3   :  { %1299 = vst [vmem:[%s4417_s2 + $0x2b8] sm:$0xff] %v878_v22  ;;  %1300 = vst [vmem:[%s4417_s2 + $0x2c0] sm:$0xff] %v879_v23  ;;  %v200_v15 = vld [vmem:[%s4416_s1 + $0x408] sm:$0xff]  ;;  %v201_v20 = vld [vmem:[%s4416_s1 + $0x410] sm:$0xff]  ;;  %v908_v23 = vmul.f32 %v574_v60, %v188_v55  ;;  %v919_v47 = vmul.f32 %v584_v26, %v199_v14  ;;  %v599_v55 = vpop.permute.xlu1 %598 }
  0xb4   :  { %1301 = vst [vmem:[%s4417_s2 + $0x2c8] sm:$0xff] %v880_v27  ;;  %1302 = vst.msk [vmem:[%s4417_s2 + $0x2d0] sm:$0xff] %vm1217_vm0, %v881_v28  ;;  %v202_v21 = vld [vmem:[%s4416_s1 + $0x418] sm:$0xff]  ;;  %v203_v22 = vld [vmem:[%s4416_s1 + $0x420] sm:$0xff]  ;;  %v920_v48 = vmul.f32 %v584_v26, %v200_v15  ;;  %v921_v49 = vmul.f32 %v584_v26, %v201_v20 }
  0xb5   :  { %1317 = vst [vmem:[%s4417_s2 + $0x348] sm:$0xff] %v896_v35  ;;  %1318 = vst [vmem:[%s4417_s2 + $0x350] sm:$0xff] %v897_v36  ;;  %v218_v27 = vld [vmem:[%s4416_s1 + $0x498] sm:$0xff]  ;;  %v219_v28 = vld [vmem:[%s4416_s1 + $0x4a0] sm:$0xff]  ;;  %v923_v54 = vmul.f32 %v584_v26, %v203_v22  ;;  %v604_v22 = vpop.permute.xlu0 %603 }
  0xb6   :  { %1319 = vst [vmem:[%s4417_s2 + $0x358] sm:$0xff] %v898_v37  ;;  %1320 = vst [vmem:[%s4417_s2 + $0x360] sm:$0xff] %v899_v38  ;;  %v220_v29 = vld [vmem:[%s4416_s1 + $0x4a8] sm:$0xff]  ;;  %v221_v30 = vld [vmem:[%s4416_s1 + $0x4b0] sm:$0xff]  ;;  %v938_v61 = vmul.f32 %v599_v55, %v218_v27  ;;  %v939_v62 = vmul.f32 %v599_v55, %v219_v28 }
  0xb7   :  { %1321 = vst [vmem:[%s4417_s2 + $0x368] sm:$0xff] %v900_v43  ;;  %1322 = vst [vmem:[%s4417_s2 + $0x370] sm:$0xff] %v901_v44  ;;  %v222_v35 = vld [vmem:[%s4416_s1 + $0x4b8] sm:$0xff]  ;;  %v223_v36 = vld [vmem:[%s4416_s1 + $0x4c0] sm:$0xff]  ;;  %v940_v63 = vmul.f32 %v599_v55, %v220_v29  ;;  %v941_v0 = vmul.f32 %v599_v55, %v221_v30 }
  0xb8   :  { %1323 = vst.msk [vmem:[%s4417_s2 + $0x378] sm:$0xff] %vm1217_vm0, %v902_v45  ;;  %1310 = vst [vmem:[%s4417_s2 + $0x310] sm:$0xff] %v889_v46  ;;  %v224_v37 = vld [vmem:[%s4416_s1 + $0x4c8] sm:$0xff]  ;;  %v211_v38 = vld [vmem:[%s4416_s1 + $0x460] sm:$0xff]  ;;  %v918_v46 = vmul.f32 %v584_v26, %v198_v13  ;;  %v942_v5 = vmul.f32 %v599_v55, %v222_v35  ;;  %v943_v6 = vmul.f32 %v599_v55, %v223_v36 }
  0xb9   :  { %1311 = vst [vmem:[%s4417_s2 + $0x318] sm:$0xff] %v890_v50  ;;  %1312 = vst [vmem:[%s4417_s2 + $0x320] sm:$0xff] %v891_v51  ;;  %v212_v43 = vld [vmem:[%s4416_s1 + $0x468] sm:$0xff]  ;;  %v213_v44 = vld [vmem:[%s4416_s1 + $0x470] sm:$0xff]  ;;  %v944_v7 = vmul.f32 %v599_v55, %v224_v37  ;;  %v931_v8 = vmul.f32 %v594_v56, %v211_v38 }
  0xba   :  { %1313 = vst [vmem:[%s4417_s2 + $0x328] sm:$0xff] %v892_v52  ;;  %1314 = vst [vmem:[%s4417_s2 + $0x330] sm:$0xff] %v893_v53  ;;  %v214_v45 = vld [vmem:[%s4416_s1 + $0x478] sm:$0xff]  ;;  %v215_v50 = vld [vmem:[%s4416_s1 + $0x480] sm:$0xff]  ;;  %v922_v53 = vmul.f32 %v584_v26, %v202_v21  ;;  %v933_v13 = vmul.f32 %v594_v56, %v213_v44  ;;  %v609_v21 = vpop.permute.xlu1 %608 }
  0xbb   :  { %1315 = vst [vmem:[%s4417_s2 + $0x338] sm:$0xff] %v894_v57  ;;  %1316 = vst.msk [vmem:[%s4417_s2 + $0x340] sm:$0xff] %vm1217_vm0, %v895_v58  ;;  %v216_v51 = vld [vmem:[%s4416_s1 + $0x488] sm:$0xff]  ;;  %v217_v52 = vld [vmem:[%s4416_s1 + $0x490] sm:$0xff]  ;;  %v934_v14 = vmul.f32 %v594_v56, %v214_v45  ;;  %v935_v15 = vmul.f32 %v594_v56, %v215_v50 }
  0xbc   :  { %1331 = vst [vmem:[%s4417_s2 + $0x3b8] sm:$0xff] %v910_v1  ;;  %1332 = vst [vmem:[%s4417_s2 + $0x3c0] sm:$0xff] %v911_v2  ;;  %v232_v57 = vld [vmem:[%s4416_s1 + $0x508] sm:$0xff]  ;;  %v233_v58 = vld [vmem:[%s4416_s1 + $0x510] sm:$0xff]  ;;  %v937_v20 = vmul.f32 %v594_v56, %v217_v52  ;;  %v614_v52 = vpop.permute.xlu0 %613 }
  0xbd   :  { %1333 = vst [vmem:[%s4417_s2 + $0x3c8] sm:$0xff] %v912_v3  ;;  %1334 = vst [vmem:[%s4417_s2 + $0x3d0] sm:$0xff] %v913_v4  ;;  %v234_v59 = vld [vmem:[%s4416_s1 + $0x518] sm:$0xff]  ;;  %v235_v60 = vld [vmem:[%s4416_s1 + $0x520] sm:$0xff]  ;;  %v952_v27 = vmul.f32 %v609_v21, %v232_v57  ;;  %v953_v28 = vmul.f32 %v609_v21, %v233_v58 }
  0xbe   :  { %1335 = vst [vmem:[%s4417_s2 + $0x3d8] sm:$0xff] %v914_v9  ;;  %1336 = vst [vmem:[%s4417_s2 + $0x3e0] sm:$0xff] %v915_v10  ;;  %v236_v1 = vld [vmem:[%s4416_s1 + $0x528] sm:$0xff]  ;;  %v237_v2 = vld [vmem:[%s4416_s1 + $0x530] sm:$0xff]  ;;  %v954_v29 = vmul.f32 %v609_v21, %v234_v59  ;;  %v955_v30 = vmul.f32 %v609_v21, %v235_v60 }
  0xbf   :  { %1337 = vst.msk [vmem:[%s4417_s2 + $0x3e8] sm:$0xff] %vm1217_vm0, %v916_v11  ;;  %1324 = vst [vmem:[%s4417_s2 + $0x380] sm:$0xff] %v903_v12  ;;  %v238_v3 = vld [vmem:[%s4416_s1 + $0x538] sm:$0xff]  ;;  %v225_v4 = vld [vmem:[%s4416_s1 + $0x4d0] sm:$0xff]  ;;  %v932_v12 = vmul.f32 %v594_v56, %v212_v43  ;;  %v956_v35 = vmul.f32 %v609_v21, %v236_v1  ;;  %v957_v36 = vmul.f32 %v609_v21, %v237_v2 }
  0xc0   :  { %1325 = vst [vmem:[%s4417_s2 + $0x388] sm:$0xff] %v904_v16  ;;  %1326 = vst [vmem:[%s4417_s2 + $0x390] sm:$0xff] %v905_v17  ;;  %v226_v9 = vld [vmem:[%s4416_s1 + $0x4d8] sm:$0xff]  ;;  %v227_v10 = vld [vmem:[%s4416_s1 + $0x4e0] sm:$0xff]  ;;  %v958_v37 = vmul.f32 %v609_v21, %v238_v3  ;;  %v945_v38 = vmul.f32 %v604_v22, %v225_v4 }
  0xc1   :  { %1327 = vst [vmem:[%s4417_s2 + $0x398] sm:$0xff] %v906_v18  ;;  %1328 = vst [vmem:[%s4417_s2 + $0x3a0] sm:$0xff] %v907_v19  ;;  %v228_v11 = vld [vmem:[%s4416_s1 + $0x4e8] sm:$0xff]  ;;  %v229_v16 = vld [vmem:[%s4416_s1 + $0x4f0] sm:$0xff]  ;;  %v936_v19 = vmul.f32 %v594_v56, %v216_v51  ;;  %v947_v43 = vmul.f32 %v604_v22, %v227_v10  ;;  %v619_v51 = vpop.permute.xlu1 %618 }
  0xc2   :  { %1329 = vst [vmem:[%s4417_s2 + $0x3a8] sm:$0xff] %v908_v23  ;;  %1330 = vst.msk [vmem:[%s4417_s2 + $0x3b0] sm:$0xff] %vm1217_vm0, %v909_v24  ;;  %v230_v17 = vld [vmem:[%s4416_s1 + $0x4f8] sm:$0xff]  ;;  %v231_v18 = vld [vmem:[%s4416_s1 + $0x500] sm:$0xff]  ;;  %v948_v44 = vmul.f32 %v604_v22, %v228_v11  ;;  %v949_v45 = vmul.f32 %v604_v22, %v229_v16 }
  0xc3   :  { %1345 = vst [vmem:[%s4417_s2 + $0x428] sm:$0xff] %v924_v31  ;;  %1346 = vst [vmem:[%s4417_s2 + $0x430] sm:$0xff] %v925_v32  ;;  %v246_v23 = vld [vmem:[%s4416_s1 + $0x578] sm:$0xff]  ;;  %v247_v24 = vld [vmem:[%s4416_s1 + $0x580] sm:$0xff]  ;;  %v951_v50 = vmul.f32 %v604_v22, %v231_v18  ;;  %v624_v18 = vpop.permute.xlu0 %623 }
  0xc4   :  { %1347 = vst [vmem:[%s4417_s2 + $0x438] sm:$0xff] %v926_v33  ;;  %1348 = vst [vmem:[%s4417_s2 + $0x440] sm:$0xff] %v927_v34  ;;  %v248_v25 = vld [vmem:[%s4416_s1 + $0x588] sm:$0xff]  ;;  %v249_v26 = vld [vmem:[%s4416_s1 + $0x590] sm:$0xff]  ;;  %v966_v57 = vmul.f32 %v619_v51, %v246_v23  ;;  %v967_v58 = vmul.f32 %v619_v51, %v247_v24 }
  0xc5   :  { %1349 = vst [vmem:[%s4417_s2 + $0x448] sm:$0xff] %v928_v39  ;;  %1350 = vst [vmem:[%s4417_s2 + $0x450] sm:$0xff] %v929_v40  ;;  %v250_v31 = vld [vmem:[%s4416_s1 + $0x598] sm:$0xff]  ;;  %v251_v32 = vld [vmem:[%s4416_s1 + $0x5a0] sm:$0xff]  ;;  %v968_v59 = vmul.f32 %v619_v51, %v248_v25  ;;  %v969_v60 = vmul.f32 %v619_v51, %v249_v26 }
  0xc6   :  { %1351 = vst.msk [vmem:[%s4417_s2 + $0x458] sm:$0xff] %vm1217_vm0, %v930_v41  ;;  %1338 = vst [vmem:[%s4417_s2 + $0x3f0] sm:$0xff] %v917_v42  ;;  %v252_v33 = vld [vmem:[%s4416_s1 + $0x5a8] sm:$0xff]  ;;  %v239_v34 = vld [vmem:[%s4416_s1 + $0x540] sm:$0xff]  ;;  %v946_v42 = vmul.f32 %v604_v22, %v226_v9  ;;  %v970_v1 = vmul.f32 %v619_v51, %v250_v31  ;;  %v971_v2 = vmul.f32 %v619_v51, %v251_v32 }
  0xc7   :  { %1339 = vst [vmem:[%s4417_s2 + $0x3f8] sm:$0xff] %v918_v46  ;;  %1340 = vst [vmem:[%s4417_s2 + $0x400] sm:$0xff] %v919_v47  ;;  %v240_v39 = vld [vmem:[%s4416_s1 + $0x548] sm:$0xff]  ;;  %v241_v40 = vld [vmem:[%s4416_s1 + $0x550] sm:$0xff]  ;;  %v972_v3 = vmul.f32 %v619_v51, %v252_v33  ;;  %v959_v4 = vmul.f32 %v614_v52, %v239_v34 }
  0xc8   :  { %1341 = vst [vmem:[%s4417_s2 + $0x408] sm:$0xff] %v920_v48  ;;  %1342 = vst [vmem:[%s4417_s2 + $0x410] sm:$0xff] %v921_v49  ;;  %v242_v41 = vld [vmem:[%s4416_s1 + $0x558] sm:$0xff]  ;;  %v243_v46 = vld [vmem:[%s4416_s1 + $0x560] sm:$0xff]  ;;  %v950_v49 = vmul.f32 %v604_v22, %v230_v17  ;;  %v961_v9 = vmul.f32 %v614_v52, %v241_v40  ;;  %v629_v17 = vpop.permute.xlu1 %628 }
  0xc9   :  { %1343 = vst [vmem:[%s4417_s2 + $0x418] sm:$0xff] %v922_v53  ;;  %1344 = vst.msk [vmem:[%s4417_s2 + $0x420] sm:$0xff] %vm1217_vm0, %v923_v54  ;;  %v244_v47 = vld [vmem:[%s4416_s1 + $0x568] sm:$0xff]  ;;  %v245_v48 = vld [vmem:[%s4416_s1 + $0x570] sm:$0xff]  ;;  %v962_v10 = vmul.f32 %v614_v52, %v242_v41  ;;  %v963_v11 = vmul.f32 %v614_v52, %v243_v46 }
  0xca   :  { %1359 = vst [vmem:[%s4417_s2 + $0x498] sm:$0xff] %v938_v61  ;;  %1360 = vst [vmem:[%s4417_s2 + $0x4a0] sm:$0xff] %v939_v62  ;;  %v260_v53 = vld [vmem:[%s4416_s1 + $0x5e8] sm:$0xff]  ;;  %v261_v54 = vld [vmem:[%s4416_s1 + $0x5f0] sm:$0xff]  ;;  %v965_v16 = vmul.f32 %v614_v52, %v245_v48  ;;  %v634_v48 = vpop.permute.xlu0 %633 }
  0xcb   :  { %1361 = vst [vmem:[%s4417_s2 + $0x4a8] sm:$0xff] %v940_v63  ;;  %1362 = vst [vmem:[%s4417_s2 + $0x4b0] sm:$0xff] %v941_v0  ;;  %v262_v55 = vld [vmem:[%s4416_s1 + $0x5f8] sm:$0xff]  ;;  %v263_v56 = vld [vmem:[%s4416_s1 + $0x600] sm:$0xff]  ;;  %v980_v23 = vmul.f32 %v629_v17, %v260_v53  ;;  %v981_v24 = vmul.f32 %v629_v17, %v261_v54 }
  0xcc   :  { %1363 = vst [vmem:[%s4417_s2 + $0x4b8] sm:$0xff] %v942_v5  ;;  %1364 = vst [vmem:[%s4417_s2 + $0x4c0] sm:$0xff] %v943_v6  ;;  %v264_v61 = vld [vmem:[%s4416_s1 + $0x608] sm:$0xff]  ;;  %v265_v62 = vld [vmem:[%s4416_s1 + $0x610] sm:$0xff]  ;;  %v982_v25 = vmul.f32 %v629_v17, %v262_v55  ;;  %v983_v26 = vmul.f32 %v629_v17, %v263_v56 }
  0xcd   :  { %1365 = vst.msk [vmem:[%s4417_s2 + $0x4c8] sm:$0xff] %vm1217_vm0, %v944_v7  ;;  %1352 = vst [vmem:[%s4417_s2 + $0x460] sm:$0xff] %v931_v8  ;;  %v266_v63 = vld [vmem:[%s4416_s1 + $0x618] sm:$0xff]  ;;  %v253_v0 = vld [vmem:[%s4416_s1 + $0x5b0] sm:$0xff]  ;;  %v960_v8 = vmul.f32 %v614_v52, %v240_v39  ;;  %v984_v31 = vmul.f32 %v629_v17, %v264_v61  ;;  %v985_v32 = vmul.f32 %v629_v17, %v265_v62 }
  0xce   :  { %1353 = vst [vmem:[%s4417_s2 + $0x468] sm:$0xff] %v932_v12  ;;  %1354 = vst [vmem:[%s4417_s2 + $0x470] sm:$0xff] %v933_v13  ;;  %v254_v5 = vld [vmem:[%s4416_s1 + $0x5b8] sm:$0xff]  ;;  %v255_v6 = vld [vmem:[%s4416_s1 + $0x5c0] sm:$0xff]  ;;  %v986_v33 = vmul.f32 %v629_v17, %v266_v63  ;;  %v973_v34 = vmul.f32 %v624_v18, %v253_v0 }
  0xcf   :  { %1355 = vst [vmem:[%s4417_s2 + $0x478] sm:$0xff] %v934_v14  ;;  %1356 = vst [vmem:[%s4417_s2 + $0x480] sm:$0xff] %v935_v15  ;;  %v256_v7 = vld [vmem:[%s4416_s1 + $0x5c8] sm:$0xff]  ;;  %v257_v12 = vld [vmem:[%s4416_s1 + $0x5d0] sm:$0xff]  ;;  %v964_v15 = vmul.f32 %v614_v52, %v244_v47  ;;  %v975_v39 = vmul.f32 %v624_v18, %v255_v6  ;;  %v639_v47 = vpop.permute.xlu1 %638 }
  0xd0   :  { %1357 = vst [vmem:[%s4417_s2 + $0x488] sm:$0xff] %v936_v19  ;;  %1358 = vst.msk [vmem:[%s4417_s2 + $0x490] sm:$0xff] %vm1217_vm0, %v937_v20  ;;  %v258_v13 = vld [vmem:[%s4416_s1 + $0x5d8] sm:$0xff]  ;;  %v259_v14 = vld [vmem:[%s4416_s1 + $0x5e0] sm:$0xff]  ;;  %v976_v40 = vmul.f32 %v624_v18, %v256_v7  ;;  %v977_v41 = vmul.f32 %v624_v18, %v257_v12 }
  0xd1   :  { %1373 = vst [vmem:[%s4417_s2 + $0x508] sm:$0xff] %v952_v27  ;;  %1374 = vst [vmem:[%s4417_s2 + $0x510] sm:$0xff] %v953_v28  ;;  %v274_v19 = vld [vmem:[%s4416_s1 + $0x658] sm:$0xff]  ;;  %v275_v20 = vld [vmem:[%s4416_s1 + $0x660] sm:$0xff]  ;;  %v979_v46 = vmul.f32 %v624_v18, %v259_v14  ;;  %v644_v14 = vpop.permute.xlu0 %643 }
  0xd2   :  { %1375 = vst [vmem:[%s4417_s2 + $0x518] sm:$0xff] %v954_v29  ;;  %1376 = vst [vmem:[%s4417_s2 + $0x520] sm:$0xff] %v955_v30  ;;  %v276_v21 = vld [vmem:[%s4416_s1 + $0x668] sm:$0xff]  ;;  %v277_v22 = vld [vmem:[%s4416_s1 + $0x670] sm:$0xff]  ;;  %v994_v53 = vmul.f32 %v639_v47, %v274_v19  ;;  %v995_v54 = vmul.f32 %v639_v47, %v275_v20 }
  0xd3   :  { %1377 = vst [vmem:[%s4417_s2 + $0x528] sm:$0xff] %v956_v35  ;;  %1378 = vst [vmem:[%s4417_s2 + $0x530] sm:$0xff] %v957_v36  ;;  %v278_v27 = vld [vmem:[%s4416_s1 + $0x678] sm:$0xff]  ;;  %v279_v28 = vld [vmem:[%s4416_s1 + $0x680] sm:$0xff]  ;;  %v996_v55 = vmul.f32 %v639_v47, %v276_v21  ;;  %v997_v56 = vmul.f32 %v639_v47, %v277_v22 }
  0xd4   :  { %1379 = vst.msk [vmem:[%s4417_s2 + $0x538] sm:$0xff] %vm1217_vm0, %v958_v37  ;;  %1366 = vst [vmem:[%s4417_s2 + $0x4d0] sm:$0xff] %v945_v38  ;;  %v280_v29 = vld [vmem:[%s4416_s1 + $0x688] sm:$0xff]  ;;  %v267_v30 = vld [vmem:[%s4416_s1 + $0x620] sm:$0xff]  ;;  %v974_v38 = vmul.f32 %v624_v18, %v254_v5  ;;  %v998_v61 = vmul.f32 %v639_v47, %v278_v27  ;;  %v999_v62 = vmul.f32 %v639_v47, %v279_v28 }
  0xd5   :  { %1367 = vst [vmem:[%s4417_s2 + $0x4d8] sm:$0xff] %v946_v42  ;;  %1368 = vst [vmem:[%s4417_s2 + $0x4e0] sm:$0xff] %v947_v43  ;;  %v268_v35 = vld [vmem:[%s4416_s1 + $0x628] sm:$0xff]  ;;  %v269_v36 = vld [vmem:[%s4416_s1 + $0x630] sm:$0xff]  ;;  %v1000_v63 = vmul.f32 %v639_v47, %v280_v29  ;;  %v987_v0 = vmul.f32 %v634_v48, %v267_v30 }
  0xd6   :  { %1369 = vst [vmem:[%s4417_s2 + $0x4e8] sm:$0xff] %v948_v44  ;;  %1370 = vst [vmem:[%s4417_s2 + $0x4f0] sm:$0xff] %v949_v45  ;;  %v270_v37 = vld [vmem:[%s4416_s1 + $0x638] sm:$0xff]  ;;  %v271_v42 = vld [vmem:[%s4416_s1 + $0x640] sm:$0xff]  ;;  %v978_v45 = vmul.f32 %v624_v18, %v258_v13  ;;  %v989_v5 = vmul.f32 %v634_v48, %v269_v36  ;;  %v649_v13 = vpop.permute.xlu1 %648 }
  0xd7   :  { %1371 = vst [vmem:[%s4417_s2 + $0x4f8] sm:$0xff] %v950_v49  ;;  %1372 = vst.msk [vmem:[%s4417_s2 + $0x500] sm:$0xff] %vm1217_vm0, %v951_v50  ;;  %v272_v43 = vld [vmem:[%s4416_s1 + $0x648] sm:$0xff]  ;;  %v273_v44 = vld [vmem:[%s4416_s1 + $0x650] sm:$0xff]  ;;  %v990_v6 = vmul.f32 %v634_v48, %v270_v37  ;;  %v991_v7 = vmul.f32 %v634_v48, %v271_v42 }
  0xd8   :  { %1387 = vst [vmem:[%s4417_s2 + $0x578] sm:$0xff] %v966_v57  ;;  %1388 = vst [vmem:[%s4417_s2 + $0x580] sm:$0xff] %v967_v58  ;;  %v288_v49 = vld [vmem:[%s4416_s1 + $0x6c8] sm:$0xff]  ;;  %v289_v50 = vld [vmem:[%s4416_s1 + $0x6d0] sm:$0xff]  ;;  %v993_v12 = vmul.f32 %v634_v48, %v273_v44  ;;  %v654_v44 = vpop.permute.xlu0 %653 }
  0xd9   :  { %1389 = vst [vmem:[%s4417_s2 + $0x588] sm:$0xff] %v968_v59  ;;  %1390 = vst [vmem:[%s4417_s2 + $0x590] sm:$0xff] %v969_v60  ;;  %v290_v51 = vld [vmem:[%s4416_s1 + $0x6d8] sm:$0xff]  ;;  %v291_v52 = vld [vmem:[%s4416_s1 + $0x6e0] sm:$0xff]  ;;  %v1008_v19 = vmul.f32 %v649_v13, %v288_v49  ;;  %v1009_v20 = vmul.f32 %v649_v13, %v289_v50 }
  0xda   :  { %1391 = vst [vmem:[%s4417_s2 + $0x598] sm:$0xff] %v970_v1  ;;  %1392 = vst [vmem:[%s4417_s2 + $0x5a0] sm:$0xff] %v971_v2  ;;  %v292_v57 = vld [vmem:[%s4416_s1 + $0x6e8] sm:$0xff]  ;;  %v293_v58 = vld [vmem:[%s4416_s1 + $0x6f0] sm:$0xff]  ;;  %v1010_v21 = vmul.f32 %v649_v13, %v290_v51  ;;  %v1011_v22 = vmul.f32 %v649_v13, %v291_v52 }
  0xdb   :  { %1393 = vst.msk [vmem:[%s4417_s2 + $0x5a8] sm:$0xff] %vm1217_vm0, %v972_v3  ;;  %1380 = vst [vmem:[%s4417_s2 + $0x540] sm:$0xff] %v959_v4  ;;  %v294_v59 = vld [vmem:[%s4416_s1 + $0x6f8] sm:$0xff]  ;;  %v281_v60 = vld [vmem:[%s4416_s1 + $0x690] sm:$0xff]  ;;  %v988_v4 = vmul.f32 %v634_v48, %v268_v35  ;;  %v1012_v27 = vmul.f32 %v649_v13, %v292_v57  ;;  %v1013_v28 = vmul.f32 %v649_v13, %v293_v58 }
  0xdc   :  { %1381 = vst [vmem:[%s4417_s2 + $0x548] sm:$0xff] %v960_v8  ;;  %1382 = vst [vmem:[%s4417_s2 + $0x550] sm:$0xff] %v961_v9  ;;  %v282_v1 = vld [vmem:[%s4416_s1 + $0x698] sm:$0xff]  ;;  %v283_v2 = vld [vmem:[%s4416_s1 + $0x6a0] sm:$0xff]  ;;  %v1014_v29 = vmul.f32 %v649_v13, %v294_v59  ;;  %v1001_v30 = vmul.f32 %v644_v14, %v281_v60 }
  0xdd   :  { %1383 = vst [vmem:[%s4417_s2 + $0x558] sm:$0xff] %v962_v10  ;;  %1384 = vst [vmem:[%s4417_s2 + $0x560] sm:$0xff] %v963_v11  ;;  %v284_v3 = vld [vmem:[%s4416_s1 + $0x6a8] sm:$0xff]  ;;  %v285_v8 = vld [vmem:[%s4416_s1 + $0x6b0] sm:$0xff]  ;;  %v992_v11 = vmul.f32 %v634_v48, %v272_v43  ;;  %v1003_v35 = vmul.f32 %v644_v14, %v283_v2  ;;  %v659_v43 = vpop.permute.xlu1 %658 }
  0xde   :  { %1385 = vst [vmem:[%s4417_s2 + $0x568] sm:$0xff] %v964_v15  ;;  %1386 = vst.msk [vmem:[%s4417_s2 + $0x570] sm:$0xff] %vm1217_vm0, %v965_v16  ;;  %v286_v9 = vld [vmem:[%s4416_s1 + $0x6b8] sm:$0xff]  ;;  %v287_v10 = vld [vmem:[%s4416_s1 + $0x6c0] sm:$0xff]  ;;  %v1004_v36 = vmul.f32 %v644_v14, %v284_v3  ;;  %v1005_v37 = vmul.f32 %v644_v14, %v285_v8 }
  0xdf   :  { %1401 = vst [vmem:[%s4417_s2 + $0x5e8] sm:$0xff] %v980_v23  ;;  %1402 = vst [vmem:[%s4417_s2 + $0x5f0] sm:$0xff] %v981_v24  ;;  %v302_v15 = vld [vmem:[%s4416_s1 + $0x738] sm:$0xff]  ;;  %v303_v16 = vld [vmem:[%s4416_s1 + $0x740] sm:$0xff]  ;;  %v1007_v42 = vmul.f32 %v644_v14, %v287_v10  ;;  %v664_v10 = vpop.permute.xlu0 %663 }
  0xe0   :  { %1403 = vst [vmem:[%s4417_s2 + $0x5f8] sm:$0xff] %v982_v25  ;;  %1404 = vst [vmem:[%s4417_s2 + $0x600] sm:$0xff] %v983_v26  ;;  %v304_v17 = vld [vmem:[%s4416_s1 + $0x748] sm:$0xff]  ;;  %v305_v18 = vld [vmem:[%s4416_s1 + $0x750] sm:$0xff]  ;;  %v1022_v49 = vmul.f32 %v659_v43, %v302_v15  ;;  %v1023_v50 = vmul.f32 %v659_v43, %v303_v16 }
  0xe1   :  { %1405 = vst [vmem:[%s4417_s2 + $0x608] sm:$0xff] %v984_v31  ;;  %1406 = vst [vmem:[%s4417_s2 + $0x610] sm:$0xff] %v985_v32  ;;  %v306_v23 = vld [vmem:[%s4416_s1 + $0x758] sm:$0xff]  ;;  %v307_v24 = vld [vmem:[%s4416_s1 + $0x760] sm:$0xff]  ;;  %v1024_v51 = vmul.f32 %v659_v43, %v304_v17  ;;  %v1025_v52 = vmul.f32 %v659_v43, %v305_v18 }
  0xe2   :  { %1407 = vst.msk [vmem:[%s4417_s2 + $0x618] sm:$0xff] %vm1217_vm0, %v986_v33  ;;  %1394 = vst [vmem:[%s4417_s2 + $0x5b0] sm:$0xff] %v973_v34  ;;  %v308_v25 = vld [vmem:[%s4416_s1 + $0x768] sm:$0xff]  ;;  %v295_v26 = vld [vmem:[%s4416_s1 + $0x700] sm:$0xff]  ;;  %v1002_v34 = vmul.f32 %v644_v14, %v282_v1  ;;  %v1026_v57 = vmul.f32 %v659_v43, %v306_v23  ;;  %v1027_v58 = vmul.f32 %v659_v43, %v307_v24 }
  0xe3   :  { %1395 = vst [vmem:[%s4417_s2 + $0x5b8] sm:$0xff] %v974_v38  ;;  %1396 = vst [vmem:[%s4417_s2 + $0x5c0] sm:$0xff] %v975_v39  ;;  %v296_v31 = vld [vmem:[%s4416_s1 + $0x708] sm:$0xff]  ;;  %v297_v32 = vld [vmem:[%s4416_s1 + $0x710] sm:$0xff]  ;;  %v1028_v59 = vmul.f32 %v659_v43, %v308_v25  ;;  %v1015_v60 = vmul.f32 %v654_v44, %v295_v26 }
  0xe4   :  { %1397 = vst [vmem:[%s4417_s2 + $0x5c8] sm:$0xff] %v976_v40  ;;  %1398 = vst [vmem:[%s4417_s2 + $0x5d0] sm:$0xff] %v977_v41  ;;  %v298_v33 = vld [vmem:[%s4416_s1 + $0x718] sm:$0xff]  ;;  %v299_v38 = vld [vmem:[%s4416_s1 + $0x720] sm:$0xff]  ;;  %v1006_v41 = vmul.f32 %v644_v14, %v286_v9  ;;  %v1017_v1 = vmul.f32 %v654_v44, %v297_v32  ;;  %v669_v9 = vpop.permute.xlu1 %668 }
  0xe5   :  { %1399 = vst [vmem:[%s4417_s2 + $0x5d8] sm:$0xff] %v978_v45  ;;  %1400 = vst.msk [vmem:[%s4417_s2 + $0x5e0] sm:$0xff] %vm1217_vm0, %v979_v46  ;;  %v300_v39 = vld [vmem:[%s4416_s1 + $0x728] sm:$0xff]  ;;  %v301_v40 = vld [vmem:[%s4416_s1 + $0x730] sm:$0xff]  ;;  %v1018_v2 = vmul.f32 %v654_v44, %v298_v33  ;;  %v1019_v3 = vmul.f32 %v654_v44, %v299_v38 }
  0xe6   :  { %1415 = vst [vmem:[%s4417_s2 + $0x658] sm:$0xff] %v994_v53  ;;  %1416 = vst [vmem:[%s4417_s2 + $0x660] sm:$0xff] %v995_v54  ;;  %v316_v45 = vld [vmem:[%s4416_s1 + $0x7a8] sm:$0xff]  ;;  %v317_v46 = vld [vmem:[%s4416_s1 + $0x7b0] sm:$0xff]  ;;  %v1021_v8 = vmul.f32 %v654_v44, %v301_v40  ;;  %v674_v40 = vpop.permute.xlu0 %673 }
  0xe7   :  { %1417 = vst [vmem:[%s4417_s2 + $0x668] sm:$0xff] %v996_v55  ;;  %1418 = vst [vmem:[%s4417_s2 + $0x670] sm:$0xff] %v997_v56  ;;  %v318_v47 = vld [vmem:[%s4416_s1 + $0x7b8] sm:$0xff]  ;;  %v319_v48 = vld [vmem:[%s4416_s1 + $0x7c0] sm:$0xff]  ;;  %v1036_v15 = vmul.f32 %v669_v9, %v316_v45  ;;  %v1037_v16 = vmul.f32 %v669_v9, %v317_v46 }
  0xe8   :  { %1419 = vst [vmem:[%s4417_s2 + $0x678] sm:$0xff] %v998_v61  ;;  %1420 = vst [vmem:[%s4417_s2 + $0x680] sm:$0xff] %v999_v62  ;;  %v320_v53 = vld [vmem:[%s4416_s1 + $0x7c8] sm:$0xff]  ;;  %v321_v54 = vld [vmem:[%s4416_s1 + $0x7d0] sm:$0xff]  ;;  %v1038_v17 = vmul.f32 %v669_v9, %v318_v47  ;;  %v1039_v18 = vmul.f32 %v669_v9, %v319_v48 }
  0xe9   :  { %1421 = vst.msk [vmem:[%s4417_s2 + $0x688] sm:$0xff] %vm1217_vm0, %v1000_v63  ;;  %1408 = vst [vmem:[%s4417_s2 + $0x620] sm:$0xff] %v987_v0  ;;  %v322_v55 = vld [vmem:[%s4416_s1 + $0x7d8] sm:$0xff]  ;;  %v309_v56 = vld [vmem:[%s4416_s1 + $0x770] sm:$0xff]  ;;  %v1016_v0 = vmul.f32 %v654_v44, %v296_v31  ;;  %v1040_v23 = vmul.f32 %v669_v9, %v320_v53  ;;  %v1041_v24 = vmul.f32 %v669_v9, %v321_v54 }
  0xea   :  { %1409 = vst [vmem:[%s4417_s2 + $0x628] sm:$0xff] %v988_v4  ;;  %1410 = vst [vmem:[%s4417_s2 + $0x630] sm:$0xff] %v989_v5  ;;  %v310_v61 = vld [vmem:[%s4416_s1 + $0x778] sm:$0xff]  ;;  %v311_v62 = vld [vmem:[%s4416_s1 + $0x780] sm:$0xff]  ;;  %v1042_v25 = vmul.f32 %v669_v9, %v322_v55  ;;  %v1029_v26 = vmul.f32 %v664_v10, %v309_v56 }
  0xeb   :  { %1411 = vst [vmem:[%s4417_s2 + $0x638] sm:$0xff] %v990_v6  ;;  %1412 = vst [vmem:[%s4417_s2 + $0x640] sm:$0xff] %v991_v7  ;;  %v312_v63 = vld [vmem:[%s4416_s1 + $0x788] sm:$0xff]  ;;  %v313_v4 = vld [vmem:[%s4416_s1 + $0x790] sm:$0xff]  ;;  %v1020_v7 = vmul.f32 %v654_v44, %v300_v39  ;;  %v1031_v31 = vmul.f32 %v664_v10, %v311_v62  ;;  %v679_v39 = vpop.permute.xlu1 %678 }
  0xec   :  { %1413 = vst [vmem:[%s4417_s2 + $0x648] sm:$0xff] %v992_v11  ;;  %1414 = vst.msk [vmem:[%s4417_s2 + $0x650] sm:$0xff] %vm1217_vm0, %v993_v12  ;;  %v314_v5 = vld [vmem:[%s4416_s1 + $0x798] sm:$0xff]  ;;  %v315_v6 = vld [vmem:[%s4416_s1 + $0x7a0] sm:$0xff]  ;;  %v1032_v32 = vmul.f32 %v664_v10, %v312_v63  ;;  %v1033_v33 = vmul.f32 %v664_v10, %v313_v4 }
  0xed   :  { %1429 = vst [vmem:[%s4417_s2 + $0x6c8] sm:$0xff] %v1008_v19  ;;  %1430 = vst [vmem:[%s4417_s2 + $0x6d0] sm:$0xff] %v1009_v20  ;;  %v330_v11 = vld [vmem:[%s4416_s1 + $0x818] sm:$0xff]  ;;  %v331_v12 = vld [vmem:[%s4416_s1 + $0x820] sm:$0xff]  ;;  %v1035_v38 = vmul.f32 %v664_v10, %v315_v6  ;;  %v684_v6 = vpop.permute.xlu0 %683 }
  0xee   :  { %1431 = vst [vmem:[%s4417_s2 + $0x6d8] sm:$0xff] %v1010_v21  ;;  %1432 = vst [vmem:[%s4417_s2 + $0x6e0] sm:$0xff] %v1011_v22  ;;  %v332_v13 = vld [vmem:[%s4416_s1 + $0x828] sm:$0xff]  ;;  %v333_v14 = vld [vmem:[%s4416_s1 + $0x830] sm:$0xff]  ;;  %v1050_v45 = vmul.f32 %v679_v39, %v330_v11  ;;  %v1051_v46 = vmul.f32 %v679_v39, %v331_v12 }
  0xef   :  { %1433 = vst [vmem:[%s4417_s2 + $0x6e8] sm:$0xff] %v1012_v27  ;;  %1434 = vst [vmem:[%s4417_s2 + $0x6f0] sm:$0xff] %v1013_v28  ;;  %v334_v19 = vld [vmem:[%s4416_s1 + $0x838] sm:$0xff]  ;;  %v335_v20 = vld [vmem:[%s4416_s1 + $0x840] sm:$0xff]  ;;  %v1052_v47 = vmul.f32 %v679_v39, %v332_v13  ;;  %v1053_v48 = vmul.f32 %v679_v39, %v333_v14 }
  0xf0   :  { %1435 = vst.msk [vmem:[%s4417_s2 + $0x6f8] sm:$0xff] %vm1217_vm0, %v1014_v29  ;;  %1422 = vst [vmem:[%s4417_s2 + $0x690] sm:$0xff] %v1001_v30  ;;  %v336_v21 = vld [vmem:[%s4416_s1 + $0x848] sm:$0xff]  ;;  %v323_v22 = vld [vmem:[%s4416_s1 + $0x7e0] sm:$0xff]  ;;  %v1030_v30 = vmul.f32 %v664_v10, %v310_v61  ;;  %v1054_v53 = vmul.f32 %v679_v39, %v334_v19  ;;  %v1055_v54 = vmul.f32 %v679_v39, %v335_v20 }
  0xf1   :  { %1423 = vst [vmem:[%s4417_s2 + $0x698] sm:$0xff] %v1002_v34  ;;  %1424 = vst [vmem:[%s4417_s2 + $0x6a0] sm:$0xff] %v1003_v35  ;;  %v324_v27 = vld [vmem:[%s4416_s1 + $0x7e8] sm:$0xff]  ;;  %v325_v28 = vld [vmem:[%s4416_s1 + $0x7f0] sm:$0xff]  ;;  %v1056_v55 = vmul.f32 %v679_v39, %v336_v21  ;;  %v1043_v56 = vmul.f32 %v674_v40, %v323_v22 }
  0xf2   :  { %1425 = vst [vmem:[%s4417_s2 + $0x6a8] sm:$0xff] %v1004_v36  ;;  %1426 = vst [vmem:[%s4417_s2 + $0x6b0] sm:$0xff] %v1005_v37  ;;  %v326_v29 = vld [vmem:[%s4416_s1 + $0x7f8] sm:$0xff]  ;;  %v327_v34 = vld [vmem:[%s4416_s1 + $0x800] sm:$0xff]  ;;  %v1034_v37 = vmul.f32 %v664_v10, %v314_v5  ;;  %v1045_v61 = vmul.f32 %v674_v40, %v325_v28  ;;  %v689_v5 = vpop.permute.xlu1 %688 }
  0xf3   :  { %1427 = vst [vmem:[%s4417_s2 + $0x6b8] sm:$0xff] %v1006_v41  ;;  %1428 = vst.msk [vmem:[%s4417_s2 + $0x6c0] sm:$0xff] %vm1217_vm0, %v1007_v42  ;;  %v328_v35 = vld [vmem:[%s4416_s1 + $0x808] sm:$0xff]  ;;  %v329_v36 = vld [vmem:[%s4416_s1 + $0x810] sm:$0xff]  ;;  %v1046_v62 = vmul.f32 %v674_v40, %v326_v29  ;;  %v1047_v63 = vmul.f32 %v674_v40, %v327_v34 }
  0xf4   :  { %1443 = vst [vmem:[%s4417_s2 + $0x738] sm:$0xff] %v1022_v49  ;;  %1444 = vst [vmem:[%s4417_s2 + $0x740] sm:$0xff] %v1023_v50  ;;  %v344_v41 = vld [vmem:[%s4416_s1 + $0x888] sm:$0xff]  ;;  %v345_v42 = vld [vmem:[%s4416_s1 + $0x890] sm:$0xff]  ;;  %v1049_v4 = vmul.f32 %v674_v40, %v329_v36  ;;  %v694_v36 = vpop.permute.xlu0 %693 }
  0xf5   :  { %1445 = vst [vmem:[%s4417_s2 + $0x748] sm:$0xff] %v1024_v51  ;;  %1446 = vst [vmem:[%s4417_s2 + $0x750] sm:$0xff] %v1025_v52  ;;  %v346_v43 = vld [vmem:[%s4416_s1 + $0x898] sm:$0xff]  ;;  %v347_v44 = vld [vmem:[%s4416_s1 + $0x8a0] sm:$0xff]  ;;  %v1064_v11 = vmul.f32 %v689_v5, %v344_v41  ;;  %v1065_v12 = vmul.f32 %v689_v5, %v345_v42 }
  0xf6   :  { %1447 = vst [vmem:[%s4417_s2 + $0x758] sm:$0xff] %v1026_v57  ;;  %1448 = vst [vmem:[%s4417_s2 + $0x760] sm:$0xff] %v1027_v58  ;;  %v348_v49 = vld [vmem:[%s4416_s1 + $0x8a8] sm:$0xff]  ;;  %v349_v50 = vld [vmem:[%s4416_s1 + $0x8b0] sm:$0xff]  ;;  %v1066_v13 = vmul.f32 %v689_v5, %v346_v43  ;;  %v1067_v14 = vmul.f32 %v689_v5, %v347_v44 }
  0xf7   :  { %1449 = vst.msk [vmem:[%s4417_s2 + $0x768] sm:$0xff] %vm1217_vm0, %v1028_v59  ;;  %1436 = vst [vmem:[%s4417_s2 + $0x700] sm:$0xff] %v1015_v60  ;;  %v350_v51 = vld [vmem:[%s4416_s1 + $0x8b8] sm:$0xff]  ;;  %v337_v52 = vld [vmem:[%s4416_s1 + $0x850] sm:$0xff]  ;;  %v1044_v60 = vmul.f32 %v674_v40, %v324_v27  ;;  %v1068_v19 = vmul.f32 %v689_v5, %v348_v49  ;;  %v1069_v20 = vmul.f32 %v689_v5, %v349_v50 }
  0xf8   :  { %1437 = vst [vmem:[%s4417_s2 + $0x708] sm:$0xff] %v1016_v0  ;;  %1438 = vst [vmem:[%s4417_s2 + $0x710] sm:$0xff] %v1017_v1  ;;  %v338_v57 = vld [vmem:[%s4416_s1 + $0x858] sm:$0xff]  ;;  %v339_v58 = vld [vmem:[%s4416_s1 + $0x860] sm:$0xff]  ;;  %v1070_v21 = vmul.f32 %v689_v5, %v350_v51  ;;  %v1057_v22 = vmul.f32 %v684_v6, %v337_v52 }
  0xf9   :  { %1439 = vst [vmem:[%s4417_s2 + $0x718] sm:$0xff] %v1018_v2  ;;  %1440 = vst [vmem:[%s4417_s2 + $0x720] sm:$0xff] %v1019_v3  ;;  %v340_v59 = vld [vmem:[%s4416_s1 + $0x868] sm:$0xff]  ;;  %v341_v0 = vld [vmem:[%s4416_s1 + $0x870] sm:$0xff]  ;;  %v1048_v3 = vmul.f32 %v674_v40, %v328_v35  ;;  %v1059_v27 = vmul.f32 %v684_v6, %v339_v58  ;;  %v699_v35 = vpop.permute.xlu1 %698 }
  0xfa   :  { %1441 = vst [vmem:[%s4417_s2 + $0x728] sm:$0xff] %v1020_v7  ;;  %1442 = vst.msk [vmem:[%s4417_s2 + $0x730] sm:$0xff] %vm1217_vm0, %v1021_v8  ;;  %v342_v1 = vld [vmem:[%s4416_s1 + $0x878] sm:$0xff]  ;;  %v343_v2 = vld [vmem:[%s4416_s1 + $0x880] sm:$0xff]  ;;  %v1060_v28 = vmul.f32 %v684_v6, %v340_v59  ;;  %v1061_v29 = vmul.f32 %v684_v6, %v341_v0 }
  0xfb   :  { %1457 = vst [vmem:[%s4417_s2 + $0x7a8] sm:$0xff] %v1036_v15  ;;  %1458 = vst [vmem:[%s4417_s2 + $0x7b0] sm:$0xff] %v1037_v16  ;;  %v358_v7 = vld [vmem:[%s4416_s1 + $0x8f8] sm:$0xff]  ;;  %v359_v8 = vld [vmem:[%s4416_s1 + $0x900] sm:$0xff]  ;;  %v1063_v34 = vmul.f32 %v684_v6, %v343_v2  ;;  %v704_v2 = vpop.permute.xlu0 %703 }
  0xfc   :  { %1459 = vst [vmem:[%s4417_s2 + $0x7b8] sm:$0xff] %v1038_v17  ;;  %1460 = vst [vmem:[%s4417_s2 + $0x7c0] sm:$0xff] %v1039_v18  ;;  %v360_v9 = vld [vmem:[%s4416_s1 + $0x908] sm:$0xff]  ;;  %v361_v10 = vld [vmem:[%s4416_s1 + $0x910] sm:$0xff]  ;;  %v1078_v41 = vmul.f32 %v699_v35, %v358_v7  ;;  %v1079_v42 = vmul.f32 %v699_v35, %v359_v8 }
  0xfd   :  { %1461 = vst [vmem:[%s4417_s2 + $0x7c8] sm:$0xff] %v1040_v23  ;;  %1462 = vst [vmem:[%s4417_s2 + $0x7d0] sm:$0xff] %v1041_v24  ;;  %v362_v15 = vld [vmem:[%s4416_s1 + $0x918] sm:$0xff]  ;;  %v363_v16 = vld [vmem:[%s4416_s1 + $0x920] sm:$0xff]  ;;  %v1080_v43 = vmul.f32 %v699_v35, %v360_v9  ;;  %v1081_v44 = vmul.f32 %v699_v35, %v361_v10 }
  0xfe   :  { %1463 = vst.msk [vmem:[%s4417_s2 + $0x7d8] sm:$0xff] %vm1217_vm0, %v1042_v25  ;;  %1450 = vst [vmem:[%s4417_s2 + $0x770] sm:$0xff] %v1029_v26  ;;  %v364_v17 = vld [vmem:[%s4416_s1 + $0x928] sm:$0xff]  ;;  %v351_v18 = vld [vmem:[%s4416_s1 + $0x8c0] sm:$0xff]  ;;  %v1058_v26 = vmul.f32 %v684_v6, %v338_v57  ;;  %v1082_v49 = vmul.f32 %v699_v35, %v362_v15  ;;  %v1083_v50 = vmul.f32 %v699_v35, %v363_v16 }
  0xff   :  { %1451 = vst [vmem:[%s4417_s2 + $0x778] sm:$0xff] %v1030_v30  ;;  %1452 = vst [vmem:[%s4417_s2 + $0x780] sm:$0xff] %v1031_v31  ;;  %v352_v23 = vld [vmem:[%s4416_s1 + $0x8c8] sm:$0xff]  ;;  %v353_v24 = vld [vmem:[%s4416_s1 + $0x8d0] sm:$0xff]  ;;  %v1084_v51 = vmul.f32 %v699_v35, %v364_v17  ;;  %v1071_v52 = vmul.f32 %v694_v36, %v351_v18 }
 0x100   :  { %1453 = vst [vmem:[%s4417_s2 + $0x788] sm:$0xff] %v1032_v32  ;;  %1454 = vst [vmem:[%s4417_s2 + $0x790] sm:$0xff] %v1033_v33  ;;  %v354_v25 = vld [vmem:[%s4416_s1 + $0x8d8] sm:$0xff]  ;;  %v355_v30 = vld [vmem:[%s4416_s1 + $0x8e0] sm:$0xff]  ;;  %v1062_v33 = vmul.f32 %v684_v6, %v342_v1  ;;  %v1073_v57 = vmul.f32 %v694_v36, %v353_v24  ;;  %v709_v1 = vpop.permute.xlu1 %708 }
 0x101   :  { %1455 = vst [vmem:[%s4417_s2 + $0x798] sm:$0xff] %v1034_v37  ;;  %1456 = vst.msk [vmem:[%s4417_s2 + $0x7a0] sm:$0xff] %vm1217_vm0, %v1035_v38  ;;  %v356_v31 = vld [vmem:[%s4416_s1 + $0x8e8] sm:$0xff]  ;;  %v357_v32 = vld [vmem:[%s4416_s1 + $0x8f0] sm:$0xff]  ;;  %v1074_v58 = vmul.f32 %v694_v36, %v354_v25  ;;  %v1075_v59 = vmul.f32 %v694_v36, %v355_v30 }
 0x102   :  { %1471 = vst [vmem:[%s4417_s2 + $0x818] sm:$0xff] %v1050_v45  ;;  %1472 = vst [vmem:[%s4417_s2 + $0x820] sm:$0xff] %v1051_v46  ;;  %v372_v37 = vld [vmem:[%s4416_s1 + $0x968] sm:$0xff]  ;;  %v373_v38 = vld [vmem:[%s4416_s1 + $0x970] sm:$0xff]  ;;  %v1077_v0 = vmul.f32 %v694_v36, %v357_v32  ;;  %v714_v32 = vpop.permute.xlu0 %713 }
 0x103   :  { %1473 = vst [vmem:[%s4417_s2 + $0x828] sm:$0xff] %v1052_v47  ;;  %1474 = vst [vmem:[%s4417_s2 + $0x830] sm:$0xff] %v1053_v48  ;;  %v374_v39 = vld [vmem:[%s4416_s1 + $0x978] sm:$0xff]  ;;  %v375_v40 = vld [vmem:[%s4416_s1 + $0x980] sm:$0xff]  ;;  %v1092_v7 = vmul.f32 %v709_v1, %v372_v37  ;;  %v1093_v8 = vmul.f32 %v709_v1, %v373_v38 }
 0x104   :  { %1475 = vst [vmem:[%s4417_s2 + $0x838] sm:$0xff] %v1054_v53  ;;  %1476 = vst [vmem:[%s4417_s2 + $0x840] sm:$0xff] %v1055_v54  ;;  %v376_v45 = vld [vmem:[%s4416_s1 + $0x988] sm:$0xff]  ;;  %v377_v46 = vld [vmem:[%s4416_s1 + $0x990] sm:$0xff]  ;;  %v1094_v9 = vmul.f32 %v709_v1, %v374_v39  ;;  %v1095_v10 = vmul.f32 %v709_v1, %v375_v40 }
 0x105   :  { %1477 = vst.msk [vmem:[%s4417_s2 + $0x848] sm:$0xff] %vm1217_vm0, %v1056_v55  ;;  %1464 = vst [vmem:[%s4417_s2 + $0x7e0] sm:$0xff] %v1043_v56  ;;  %v378_v47 = vld [vmem:[%s4416_s1 + $0x998] sm:$0xff]  ;;  %v365_v48 = vld [vmem:[%s4416_s1 + $0x930] sm:$0xff]  ;;  %v1072_v56 = vmul.f32 %v694_v36, %v352_v23  ;;  %v1096_v15 = vmul.f32 %v709_v1, %v376_v45  ;;  %v1097_v16 = vmul.f32 %v709_v1, %v377_v46 }
 0x106   :  { %1465 = vst [vmem:[%s4417_s2 + $0x7e8] sm:$0xff] %v1044_v60  ;;  %1466 = vst [vmem:[%s4417_s2 + $0x7f0] sm:$0xff] %v1045_v61  ;;  %v366_v53 = vld [vmem:[%s4416_s1 + $0x938] sm:$0xff]  ;;  %v367_v54 = vld [vmem:[%s4416_s1 + $0x940] sm:$0xff]  ;;  %v1098_v17 = vmul.f32 %v709_v1, %v378_v47  ;;  %v1085_v18 = vmul.f32 %v704_v2, %v365_v48 }
 0x107   :  { %1467 = vst [vmem:[%s4417_s2 + $0x7f8] sm:$0xff] %v1046_v62  ;;  %1468 = vst [vmem:[%s4417_s2 + $0x800] sm:$0xff] %v1047_v63  ;;  %v368_v55 = vld [vmem:[%s4416_s1 + $0x948] sm:$0xff]  ;;  %v369_v60 = vld [vmem:[%s4416_s1 + $0x950] sm:$0xff]  ;;  %v1076_v63 = vmul.f32 %v694_v36, %v356_v31  ;;  %v1087_v23 = vmul.f32 %v704_v2, %v367_v54  ;;  %v719_v31 = vpop.permute.xlu1 %718 }
 0x108   :  { %1469 = vst [vmem:[%s4417_s2 + $0x808] sm:$0xff] %v1048_v3  ;;  %1470 = vst.msk [vmem:[%s4417_s2 + $0x810] sm:$0xff] %vm1217_vm0, %v1049_v4  ;;  %v370_v61 = vld [vmem:[%s4416_s1 + $0x958] sm:$0xff]  ;;  %v371_v62 = vld [vmem:[%s4416_s1 + $0x960] sm:$0xff]  ;;  %v1088_v24 = vmul.f32 %v704_v2, %v368_v55  ;;  %v1089_v25 = vmul.f32 %v704_v2, %v369_v60 }
 0x109   :  { %1485 = vst [vmem:[%s4417_s2 + $0x888] sm:$0xff] %v1064_v11  ;;  %1486 = vst [vmem:[%s4417_s2 + $0x890] sm:$0xff] %v1065_v12  ;;  %v386_v3 = vld [vmem:[%s4416_s1 + $0x9d8] sm:$0xff]  ;;  %v387_v4 = vld [vmem:[%s4416_s1 + $0x9e0] sm:$0xff]  ;;  %v1091_v30 = vmul.f32 %v704_v2, %v371_v62  ;;  %v724_v62 = vpop.permute.xlu0 %723 }
 0x10a   :  { %1487 = vst [vmem:[%s4417_s2 + $0x898] sm:$0xff] %v1066_v13  ;;  %1488 = vst [vmem:[%s4417_s2 + $0x8a0] sm:$0xff] %v1067_v14  ;;  %v388_v5 = vld [vmem:[%s4416_s1 + $0x9e8] sm:$0xff]  ;;  %v389_v6 = vld [vmem:[%s4416_s1 + $0x9f0] sm:$0xff]  ;;  %v1106_v37 = vmul.f32 %v719_v31, %v386_v3  ;;  %v1107_v38 = vmul.f32 %v719_v31, %v387_v4 }
 0x10b   :  { %1489 = vst [vmem:[%s4417_s2 + $0x8a8] sm:$0xff] %v1068_v19  ;;  %1490 = vst [vmem:[%s4417_s2 + $0x8b0] sm:$0xff] %v1069_v20  ;;  %v390_v11 = vld [vmem:[%s4416_s1 + $0x9f8] sm:$0xff]  ;;  %v391_v12 = vld [vmem:[%s4416_s1 + $0xa00] sm:$0xff]  ;;  %v1108_v39 = vmul.f32 %v719_v31, %v388_v5  ;;  %v1109_v40 = vmul.f32 %v719_v31, %v389_v6 }
 0x10c   :  { %1491 = vst.msk [vmem:[%s4417_s2 + $0x8b8] sm:$0xff] %vm1217_vm0, %v1070_v21  ;;  %1478 = vst [vmem:[%s4417_s2 + $0x850] sm:$0xff] %v1057_v22  ;;  %v392_v13 = vld [vmem:[%s4416_s1 + $0xa08] sm:$0xff]  ;;  %v379_v14 = vld [vmem:[%s4416_s1 + $0x9a0] sm:$0xff]  ;;  %v1086_v22 = vmul.f32 %v704_v2, %v366_v53  ;;  %v1110_v45 = vmul.f32 %v719_v31, %v390_v11  ;;  %v1111_v46 = vmul.f32 %v719_v31, %v391_v12 }
 0x10d   :  { %1479 = vst [vmem:[%s4417_s2 + $0x858] sm:$0xff] %v1058_v26  ;;  %1480 = vst [vmem:[%s4417_s2 + $0x860] sm:$0xff] %v1059_v27  ;;  %v380_v19 = vld [vmem:[%s4416_s1 + $0x9a8] sm:$0xff]  ;;  %v381_v20 = vld [vmem:[%s4416_s1 + $0x9b0] sm:$0xff]  ;;  %v1112_v47 = vmul.f32 %v719_v31, %v392_v13  ;;  %v1099_v48 = vmul.f32 %v714_v32, %v379_v14 }
 0x10e   :  { %1481 = vst [vmem:[%s4417_s2 + $0x868] sm:$0xff] %v1060_v28  ;;  %1482 = vst [vmem:[%s4417_s2 + $0x870] sm:$0xff] %v1061_v29  ;;  %v382_v21 = vld [vmem:[%s4416_s1 + $0x9b8] sm:$0xff]  ;;  %v383_v26 = vld [vmem:[%s4416_s1 + $0x9c0] sm:$0xff]  ;;  %v1090_v29 = vmul.f32 %v704_v2, %v370_v61  ;;  %v1101_v53 = vmul.f32 %v714_v32, %v381_v20  ;;  %v729_v61 = vpop.permute.xlu1 %728 }
 0x10f   :  { %1483 = vst [vmem:[%s4417_s2 + $0x878] sm:$0xff] %v1062_v33  ;;  %1484 = vst.msk [vmem:[%s4417_s2 + $0x880] sm:$0xff] %vm1217_vm0, %v1063_v34  ;;  %v384_v27 = vld [vmem:[%s4416_s1 + $0x9c8] sm:$0xff]  ;;  %v385_v28 = vld [vmem:[%s4416_s1 + $0x9d0] sm:$0xff]  ;;  %v1102_v54 = vmul.f32 %v714_v32, %v382_v21  ;;  %v1103_v55 = vmul.f32 %v714_v32, %v383_v26 }
 0x110   :  { %1499 = vst [vmem:[%s4417_s2 + $0x8f8] sm:$0xff] %v1078_v41  ;;  %1500 = vst [vmem:[%s4417_s2 + $0x900] sm:$0xff] %v1079_v42  ;;  %v400_v33 = vld [vmem:[%s4416_s1 + $0xa48] sm:$0xff]  ;;  %v401_v34 = vld [vmem:[%s4416_s1 + $0xa50] sm:$0xff]  ;;  %v1105_v60 = vmul.f32 %v714_v32, %v385_v28  ;;  %v734_v28 = vpop.permute.xlu0 %733 }
 0x111   :  { %1501 = vst [vmem:[%s4417_s2 + $0x908] sm:$0xff] %v1080_v43  ;;  %1502 = vst [vmem:[%s4417_s2 + $0x910] sm:$0xff] %v1081_v44  ;;  %v402_v35 = vld [vmem:[%s4416_s1 + $0xa58] sm:$0xff]  ;;  %v403_v36 = vld [vmem:[%s4416_s1 + $0xa60] sm:$0xff]  ;;  %v1120_v3 = vmul.f32 %v729_v61, %v400_v33  ;;  %v1121_v4 = vmul.f32 %v729_v61, %v401_v34 }
 0x112   :  { %1503 = vst [vmem:[%s4417_s2 + $0x918] sm:$0xff] %v1082_v49  ;;  %1504 = vst [vmem:[%s4417_s2 + $0x920] sm:$0xff] %v1083_v50  ;;  %v404_v41 = vld [vmem:[%s4416_s1 + $0xa68] sm:$0xff]  ;;  %v405_v42 = vld [vmem:[%s4416_s1 + $0xa70] sm:$0xff]  ;;  %v1122_v5 = vmul.f32 %v729_v61, %v402_v35  ;;  %v1123_v6 = vmul.f32 %v729_v61, %v403_v36 }
 0x113   :  { %1505 = vst.msk [vmem:[%s4417_s2 + $0x928] sm:$0xff] %vm1217_vm0, %v1084_v51  ;;  %1492 = vst [vmem:[%s4417_s2 + $0x8c0] sm:$0xff] %v1071_v52  ;;  %v406_v43 = vld [vmem:[%s4416_s1 + $0xa78] sm:$0xff]  ;;  %v393_v44 = vld [vmem:[%s4416_s1 + $0xa10] sm:$0xff]  ;;  %v1100_v52 = vmul.f32 %v714_v32, %v380_v19  ;;  %v1124_v11 = vmul.f32 %v729_v61, %v404_v41  ;;  %v1125_v12 = vmul.f32 %v729_v61, %v405_v42 }
 0x114   :  { %1493 = vst [vmem:[%s4417_s2 + $0x8c8] sm:$0xff] %v1072_v56  ;;  %1494 = vst [vmem:[%s4417_s2 + $0x8d0] sm:$0xff] %v1073_v57  ;;  %v394_v49 = vld [vmem:[%s4416_s1 + $0xa18] sm:$0xff]  ;;  %v395_v50 = vld [vmem:[%s4416_s1 + $0xa20] sm:$0xff]  ;;  %v1126_v13 = vmul.f32 %v729_v61, %v406_v43  ;;  %v1113_v14 = vmul.f32 %v724_v62, %v393_v44 }
 0x115   :  { %1495 = vst [vmem:[%s4417_s2 + $0x8d8] sm:$0xff] %v1074_v58  ;;  %1496 = vst [vmem:[%s4417_s2 + $0x8e0] sm:$0xff] %v1075_v59  ;;  %v396_v51 = vld [vmem:[%s4416_s1 + $0xa28] sm:$0xff]  ;;  %v397_v56 = vld [vmem:[%s4416_s1 + $0xa30] sm:$0xff]  ;;  %v1104_v59 = vmul.f32 %v714_v32, %v384_v27  ;;  %v1115_v19 = vmul.f32 %v724_v62, %v395_v50  ;;  %v739_v27 = vpop.permute.xlu1 %738 }
 0x116   :  { %1497 = vst [vmem:[%s4417_s2 + $0x8e8] sm:$0xff] %v1076_v63  ;;  %1498 = vst.msk [vmem:[%s4417_s2 + $0x8f0] sm:$0xff] %vm1217_vm0, %v1077_v0  ;;  %v398_v57 = vld [vmem:[%s4416_s1 + $0xa38] sm:$0xff]  ;;  %v399_v58 = vld [vmem:[%s4416_s1 + $0xa40] sm:$0xff]  ;;  %v1116_v20 = vmul.f32 %v724_v62, %v396_v51  ;;  %v1117_v21 = vmul.f32 %v724_v62, %v397_v56 }
 0x117   :  { %1513 = vst [vmem:[%s4417_s2 + $0x968] sm:$0xff] %v1092_v7  ;;  %1514 = vst [vmem:[%s4417_s2 + $0x970] sm:$0xff] %v1093_v8  ;;  %v414_v63 = vld [vmem:[%s4416_s1 + $0xab8] sm:$0xff]  ;;  %v415_v0 = vld [vmem:[%s4416_s1 + $0xac0] sm:$0xff]  ;;  %v1119_v26 = vmul.f32 %v724_v62, %v399_v58  ;;  %v744_v58 = vpop.permute.xlu0 %743 }
 0x118   :  { %1515 = vst [vmem:[%s4417_s2 + $0x978] sm:$0xff] %v1094_v9  ;;  %1516 = vst [vmem:[%s4417_s2 + $0x980] sm:$0xff] %v1095_v10  ;;  %v416_v1 = vld [vmem:[%s4416_s1 + $0xac8] sm:$0xff]  ;;  %v417_v2 = vld [vmem:[%s4416_s1 + $0xad0] sm:$0xff]  ;;  %v1134_v33 = vmul.f32 %v739_v27, %v414_v63  ;;  %v1135_v34 = vmul.f32 %v739_v27, %v415_v0 }
 0x119   :  { %1517 = vst [vmem:[%s4417_s2 + $0x988] sm:$0xff] %v1096_v15  ;;  %1518 = vst [vmem:[%s4417_s2 + $0x990] sm:$0xff] %v1097_v16  ;;  %v418_v7 = vld [vmem:[%s4416_s1 + $0xad8] sm:$0xff]  ;;  %v419_v8 = vld [vmem:[%s4416_s1 + $0xae0] sm:$0xff]  ;;  %v1136_v35 = vmul.f32 %v739_v27, %v416_v1  ;;  %v1137_v36 = vmul.f32 %v739_v27, %v417_v2 }
 0x11a   :  { %1519 = vst.msk [vmem:[%s4417_s2 + $0x998] sm:$0xff] %vm1217_vm0, %v1098_v17  ;;  %1506 = vst [vmem:[%s4417_s2 + $0x930] sm:$0xff] %v1085_v18  ;;  %v420_v9 = vld [vmem:[%s4416_s1 + $0xae8] sm:$0xff]  ;;  %v407_v10 = vld [vmem:[%s4416_s1 + $0xa80] sm:$0xff]  ;;  %v1114_v18 = vmul.f32 %v724_v62, %v394_v49  ;;  %v1138_v41 = vmul.f32 %v739_v27, %v418_v7  ;;  %v1139_v42 = vmul.f32 %v739_v27, %v419_v8 }
 0x11b   :  { %1507 = vst [vmem:[%s4417_s2 + $0x938] sm:$0xff] %v1086_v22  ;;  %1508 = vst [vmem:[%s4417_s2 + $0x940] sm:$0xff] %v1087_v23  ;;  %v408_v15 = vld [vmem:[%s4416_s1 + $0xa88] sm:$0xff]  ;;  %v409_v16 = vld [vmem:[%s4416_s1 + $0xa90] sm:$0xff]  ;;  %v1140_v43 = vmul.f32 %v739_v27, %v420_v9  ;;  %v1127_v44 = vmul.f32 %v734_v28, %v407_v10 }
 0x11c   :  { %1509 = vst [vmem:[%s4417_s2 + $0x948] sm:$0xff] %v1088_v24  ;;  %1510 = vst [vmem:[%s4417_s2 + $0x950] sm:$0xff] %v1089_v25  ;;  %v410_v17 = vld [vmem:[%s4416_s1 + $0xa98] sm:$0xff]  ;;  %v411_v22 = vld [vmem:[%s4416_s1 + $0xaa0] sm:$0xff]  ;;  %v1118_v25 = vmul.f32 %v724_v62, %v398_v57  ;;  %v1129_v49 = vmul.f32 %v734_v28, %v409_v16  ;;  %v749_v57 = vpop.permute.xlu1 %748 }
 0x11d   :  { %1511 = vst [vmem:[%s4417_s2 + $0x958] sm:$0xff] %v1090_v29  ;;  %1512 = vst.msk [vmem:[%s4417_s2 + $0x960] sm:$0xff] %vm1217_vm0, %v1091_v30  ;;  %v412_v23 = vld [vmem:[%s4416_s1 + $0xaa8] sm:$0xff]  ;;  %v413_v24 = vld [vmem:[%s4416_s1 + $0xab0] sm:$0xff]  ;;  %v1130_v50 = vmul.f32 %v734_v28, %v410_v17  ;;  %v1131_v51 = vmul.f32 %v734_v28, %v411_v22 }
 0x11e   :  { %1527 = vst [vmem:[%s4417_s2 + $0x9d8] sm:$0xff] %v1106_v37  ;;  %1528 = vst [vmem:[%s4417_s2 + $0x9e0] sm:$0xff] %v1107_v38  ;;  %v428_v29 = vld [vmem:[%s4416_s1 + $0xb28] sm:$0xff]  ;;  %v429_v30 = vld [vmem:[%s4416_s1 + $0xb30] sm:$0xff]  ;;  %v1133_v56 = vmul.f32 %v734_v28, %v413_v24  ;;  %v754_v24 = vpop.permute.xlu0 %753 }
 0x11f   :  { %1529 = vst [vmem:[%s4417_s2 + $0x9e8] sm:$0xff] %v1108_v39  ;;  %1530 = vst [vmem:[%s4417_s2 + $0x9f0] sm:$0xff] %v1109_v40  ;;  %v430_v31 = vld [vmem:[%s4416_s1 + $0xb38] sm:$0xff]  ;;  %v431_v32 = vld [vmem:[%s4416_s1 + $0xb40] sm:$0xff]  ;;  %v1148_v63 = vmul.f32 %v749_v57, %v428_v29  ;;  %v1149_v0 = vmul.f32 %v749_v57, %v429_v30 }
 0x120   :  { %1531 = vst [vmem:[%s4417_s2 + $0x9f8] sm:$0xff] %v1110_v45  ;;  %1532 = vst [vmem:[%s4417_s2 + $0xa00] sm:$0xff] %v1111_v46  ;;  %v432_v37 = vld [vmem:[%s4416_s1 + $0xb48] sm:$0xff]  ;;  %v433_v38 = vld [vmem:[%s4416_s1 + $0xb50] sm:$0xff]  ;;  %v1150_v1 = vmul.f32 %v749_v57, %v430_v31  ;;  %v1151_v2 = vmul.f32 %v749_v57, %v431_v32 }
 0x121   :  { %1533 = vst.msk [vmem:[%s4417_s2 + $0xa08] sm:$0xff] %vm1217_vm0, %v1112_v47  ;;  %1520 = vst [vmem:[%s4417_s2 + $0x9a0] sm:$0xff] %v1099_v48  ;;  %v434_v39 = vld [vmem:[%s4416_s1 + $0xb58] sm:$0xff]  ;;  %v421_v40 = vld [vmem:[%s4416_s1 + $0xaf0] sm:$0xff]  ;;  %v1128_v48 = vmul.f32 %v734_v28, %v408_v15  ;;  %v1152_v7 = vmul.f32 %v749_v57, %v432_v37  ;;  %v1153_v8 = vmul.f32 %v749_v57, %v433_v38 }
 0x122   :  { %1521 = vst [vmem:[%s4417_s2 + $0x9a8] sm:$0xff] %v1100_v52  ;;  %1522 = vst [vmem:[%s4417_s2 + $0x9b0] sm:$0xff] %v1101_v53  ;;  %v422_v45 = vld [vmem:[%s4416_s1 + $0xaf8] sm:$0xff]  ;;  %v423_v46 = vld [vmem:[%s4416_s1 + $0xb00] sm:$0xff]  ;;  %v1154_v9 = vmul.f32 %v749_v57, %v434_v39  ;;  %v1141_v10 = vmul.f32 %v744_v58, %v421_v40 }
 0x123   :  { %1523 = vst [vmem:[%s4417_s2 + $0x9b8] sm:$0xff] %v1102_v54  ;;  %1524 = vst [vmem:[%s4417_s2 + $0x9c0] sm:$0xff] %v1103_v55  ;;  %v424_v47 = vld [vmem:[%s4416_s1 + $0xb08] sm:$0xff]  ;;  %v425_v52 = vld [vmem:[%s4416_s1 + $0xb10] sm:$0xff]  ;;  %v1132_v55 = vmul.f32 %v734_v28, %v412_v23  ;;  %v1143_v15 = vmul.f32 %v744_v58, %v423_v46  ;;  %v759_v23 = vpop.permute.xlu1 %758 }
 0x124   :  { %1525 = vst [vmem:[%s4417_s2 + $0x9c8] sm:$0xff] %v1104_v59  ;;  %1526 = vst.msk [vmem:[%s4417_s2 + $0x9d0] sm:$0xff] %vm1217_vm0, %v1105_v60  ;;  %v426_v53 = vld [vmem:[%s4416_s1 + $0xb18] sm:$0xff]  ;;  %v427_v54 = vld [vmem:[%s4416_s1 + $0xb20] sm:$0xff]  ;;  %v1144_v16 = vmul.f32 %v744_v58, %v424_v47  ;;  %v1145_v17 = vmul.f32 %v744_v58, %v425_v52 }
 0x125   :  { %1541 = vst [vmem:[%s4417_s2 + $0xa48] sm:$0xff] %v1120_v3  ;;  %1542 = vst [vmem:[%s4417_s2 + $0xa50] sm:$0xff] %v1121_v4  ;;  %v442_v59 = vld [vmem:[%s4416_s1 + $0xb98] sm:$0xff]  ;;  %v443_v60 = vld [vmem:[%s4416_s1 + $0xba0] sm:$0xff]  ;;  %v1147_v22 = vmul.f32 %v744_v58, %v427_v54  ;;  %v764_v54 = vpop.permute.xlu0 %763 }
 0x126   :  { %1543 = vst [vmem:[%s4417_s2 + $0xa58] sm:$0xff] %v1122_v5  ;;  %1544 = vst [vmem:[%s4417_s2 + $0xa60] sm:$0xff] %v1123_v6  ;;  %v444_v61 = vld [vmem:[%s4416_s1 + $0xba8] sm:$0xff]  ;;  %v445_v62 = vld [vmem:[%s4416_s1 + $0xbb0] sm:$0xff]  ;;  %v1162_v29 = vmul.f32 %v759_v23, %v442_v59  ;;  %v1163_v30 = vmul.f32 %v759_v23, %v443_v60 }
 0x127   :  { %1545 = vst [vmem:[%s4417_s2 + $0xa68] sm:$0xff] %v1124_v11  ;;  %1546 = vst [vmem:[%s4417_s2 + $0xa70] sm:$0xff] %v1125_v12  ;;  %v446_v3 = vld [vmem:[%s4416_s1 + $0xbb8] sm:$0xff]  ;;  %v447_v4 = vld [vmem:[%s4416_s1 + $0xbc0] sm:$0xff]  ;;  %v1164_v31 = vmul.f32 %v759_v23, %v444_v61  ;;  %v1165_v32 = vmul.f32 %v759_v23, %v445_v62  ;;  %v769_v52 = vpop.permute.xlu1 %768 }
 0x128   :  { %1547 = vst.msk [vmem:[%s4417_s2 + $0xa78] sm:$0xff] %vm1217_vm0, %v1126_v13  ;;  %1534 = vst [vmem:[%s4417_s2 + $0xa10] sm:$0xff] %v1113_v14  ;;  %v448_v5 = vld [vmem:[%s4416_s1 + $0xbc8] sm:$0xff]  ;;  %v435_v6 = vld [vmem:[%s4416_s1 + $0xb60] sm:$0xff]  ;;  %v1142_v14 = vmul.f32 %v744_v58, %v422_v45  ;;  %v1167_v37 = vmul.f32 %v759_v23, %v447_v4 }
 0x129   :  { %1535 = vst [vmem:[%s4417_s2 + $0xa18] sm:$0xff] %v1114_v18  ;;  %1536 = vst [vmem:[%s4417_s2 + $0xa20] sm:$0xff] %v1115_v19  ;;  %v436_v11 = vld [vmem:[%s4416_s1 + $0xb68] sm:$0xff]  ;;  %v437_v12 = vld [vmem:[%s4416_s1 + $0xb70] sm:$0xff]  ;;  %v1168_v38 = vmul.f32 %v759_v23, %v448_v5  ;;  %v1155_v39 = vmul.f32 %v754_v24, %v435_v6 }
 0x12a   :  { %1537 = vst [vmem:[%s4417_s2 + $0xa28] sm:$0xff] %v1116_v20  ;;  %1538 = vst [vmem:[%s4417_s2 + $0xa30] sm:$0xff] %v1117_v21  ;;  %v438_v13 = vld [vmem:[%s4416_s1 + $0xb78] sm:$0xff]  ;;  %v439_v18 = vld [vmem:[%s4416_s1 + $0xb80] sm:$0xff]  ;;  %v1146_v21 = vmul.f32 %v744_v58, %v426_v53 }
 0x12b   :  { %1539 = vst [vmem:[%s4417_s2 + $0xa38] sm:$0xff] %v1118_v25  ;;  %1540 = vst.msk [vmem:[%s4417_s2 + $0xa40] sm:$0xff] %vm1217_vm0, %v1119_v26  ;;  %v440_v19 = vld [vmem:[%s4416_s1 + $0xb88] sm:$0xff]  ;;  %v441_v20 = vld [vmem:[%s4416_s1 + $0xb90] sm:$0xff]  ;;  %v1158_v45 = vmul.f32 %v754_v24, %v438_v13  ;;  %v1159_v46 = vmul.f32 %v754_v24, %v439_v18 }
 0x12c   :  { %1555 = vst [vmem:[%s4417_s2 + $0xab8] sm:$0xff] %v1134_v33  ;;  %1556 = vst [vmem:[%s4417_s2 + $0xac0] sm:$0xff] %v1135_v34  ;;  %v456_v25 = vld [vmem:[%s4416_s1 + $0xc08] sm:$0xff]  ;;  %v457_v26 = vld [vmem:[%s4416_s1 + $0xc10] sm:$0xff] }
 0x12d   :  { %1557 = vst [vmem:[%s4417_s2 + $0xac8] sm:$0xff] %v1136_v35  ;;  %1558 = vst [vmem:[%s4417_s2 + $0xad0] sm:$0xff] %v1137_v36  ;;  %v458_v27 = vld [vmem:[%s4416_s1 + $0xc18] sm:$0xff]  ;;  %v459_v28 = vld [vmem:[%s4416_s1 + $0xc20] sm:$0xff]  ;;  %v1166_v36 = vmul.f32 %v759_v23, %v446_v3  ;;  %v1176_v57 = vmul.f32 %v769_v52, %v456_v25  ;;  %v1177_v58 = vmul.f32 %v769_v52, %v457_v26 }
 0x12e   :  { %1559 = vst [vmem:[%s4417_s2 + $0xad8] sm:$0xff] %v1138_v41  ;;  %1560 = vst [vmem:[%s4417_s2 + $0xae0] sm:$0xff] %v1139_v42  ;;  %v460_v33 = vld [vmem:[%s4416_s1 + $0xc28] sm:$0xff]  ;;  %v461_v34 = vld [vmem:[%s4416_s1 + $0xc30] sm:$0xff]  ;;  %v1178_v59 = vmul.f32 %v769_v52, %v458_v27  ;;  %v1179_v60 = vmul.f32 %v769_v52, %v459_v28 }
 0x12f   :  { %1561 = vst.msk [vmem:[%s4417_s2 + $0xae8] sm:$0xff] %vm1217_vm0, %v1140_v43  ;;  %1548 = vst [vmem:[%s4417_s2 + $0xa80] sm:$0xff] %v1127_v44  ;;  %v462_v35 = vld [vmem:[%s4416_s1 + $0xc38] sm:$0xff]  ;;  %v449_v40 = vld [vmem:[%s4416_s1 + $0xbd0] sm:$0xff]  ;;  %v1156_v43 = vmul.f32 %v754_v24, %v436_v11  ;;  %v1157_v44 = vmul.f32 %v754_v24, %v437_v12 }
 0x130   :  { %1549 = vst [vmem:[%s4417_s2 + $0xa88] sm:$0xff] %v1128_v48  ;;  %1550 = vst [vmem:[%s4417_s2 + $0xa90] sm:$0xff] %v1129_v49  ;;  %v450_v41 = vld [vmem:[%s4416_s1 + $0xbd8] sm:$0xff]  ;;  %v451_v42 = vld [vmem:[%s4416_s1 + $0xbe0] sm:$0xff]  ;;  %v1169_v3 = vmul.f32 %v764_v54, %v449_v40 }
 0x131   :  { %1551 = vst [vmem:[%s4417_s2 + $0xa98] sm:$0xff] %v1130_v50  ;;  %1552 = vst [vmem:[%s4417_s2 + $0xaa0] sm:$0xff] %v1131_v51  ;;  %v452_v47 = vld [vmem:[%s4416_s1 + $0xbe8] sm:$0xff]  ;;  %v453_v48 = vld [vmem:[%s4416_s1 + $0xbf0] sm:$0xff]  ;;  %v1160_v50 = vmul.f32 %v754_v24, %v440_v19  ;;  %v1161_v51 = vmul.f32 %v754_v24, %v441_v20  ;;  %v774_v20 = vpop.permute.xlu0 %773 }
 0x132   :  { %1553 = vst [vmem:[%s4417_s2 + $0xaa8] sm:$0xff] %v1132_v55  ;;  %1554 = vst.msk [vmem:[%s4417_s2 + $0xab0] sm:$0xff] %vm1217_vm0, %v1133_v56  ;;  %v454_v49 = vld [vmem:[%s4416_s1 + $0xbf8] sm:$0xff]  ;;  %v455_v53 = vld [vmem:[%s4416_s1 + $0xc00] sm:$0xff] }
 0x133   :  { %1569 = vst [vmem:[%s4417_s2 + $0xb28] sm:$0xff] %v1148_v63  ;;  %1570 = vst [vmem:[%s4417_s2 + $0xb30] sm:$0xff] %v1149_v0  ;;  %v470_v55 = vld [vmem:[%s4416_s1 + $0xc78] sm:$0xff]  ;;  %v471_v56 = vld [vmem:[%s4416_s1 + $0xc80] sm:$0xff]  ;;  %v1180_v0 = vmul.f32 %v769_v52, %v460_v33 }
 0x134   :  { %1571 = vst [vmem:[%s4417_s2 + $0xb38] sm:$0xff] %v1150_v1  ;;  %1572 = vst [vmem:[%s4417_s2 + $0xb40] sm:$0xff] %v1151_v2  ;;  %v472_v61 = vld [vmem:[%s4416_s1 + $0xc88] sm:$0xff]  ;;  %v473_v62 = vld [vmem:[%s4416_s1 + $0xc90] sm:$0xff]  ;;  %v1181_v1 = vmul.f32 %v769_v52, %v461_v34  ;;  %v1182_v2 = vmul.f32 %v769_v52, %v462_v35 }
 0x135   :  { %1573 = vst [vmem:[%s4417_s2 + $0xb48] sm:$0xff] %v1152_v7  ;;  %1574 = vst [vmem:[%s4417_s2 + $0xb50] sm:$0xff] %v1153_v8  ;;  %v474_v63 = vld [vmem:[%s4416_s1 + $0xc98] sm:$0xff]  ;;  %v475_v4 = vld [vmem:[%s4416_s1 + $0xca0] sm:$0xff]  ;;  %v1170_v7 = vmul.f32 %v764_v54, %v450_v41  ;;  %v1171_v8 = vmul.f32 %v764_v54, %v451_v42 }
 0x136   :  { %1575 = vst.msk [vmem:[%s4417_s2 + $0xb58] sm:$0xff] %vm1217_vm0, %v1154_v9  ;;  %1562 = vst [vmem:[%s4417_s2 + $0xaf0] sm:$0xff] %v1141_v10  ;;  %v476_v5 = vld [vmem:[%s4416_s1 + $0xca8] sm:$0xff]  ;;  %v463_v6 = vld [vmem:[%s4416_s1 + $0xc40] sm:$0xff]  ;;  %v1172_v9 = vmul.f32 %v764_v54, %v452_v47  ;;  %v1173_v10 = vmul.f32 %v764_v54, %v453_v48  ;;  %v784_v48 = vpop.permute.xlu0 %783 }
 0x137   :  { %1563 = vst [vmem:[%s4417_s2 + $0xaf8] sm:$0xff] %v1142_v14  ;;  %1564 = vst [vmem:[%s4417_s2 + $0xb00] sm:$0xff] %v1143_v15  ;;  %v464_v11 = vld [vmem:[%s4416_s1 + $0xc48] sm:$0xff]  ;;  %v465_v12 = vld [vmem:[%s4416_s1 + $0xc50] sm:$0xff]  ;;  %v1174_v14 = vmul.f32 %v764_v54, %v454_v49  ;;  %v1175_v15 = vmul.f32 %v764_v54, %v455_v53 }
 0x138   :  { %1565 = vst [vmem:[%s4417_s2 + $0xb08] sm:$0xff] %v1144_v16  ;;  %1566 = vst [vmem:[%s4417_s2 + $0xb10] sm:$0xff] %v1145_v17  ;;  %v466_v13 = vld [vmem:[%s4416_s1 + $0xc58] sm:$0xff]  ;;  %v779_v16 = vpop.permute.xlu1 %778  ;;  %v467_v17 = vld [vmem:[%s4416_s1 + $0xc60] sm:$0xff]  ;;  %v1184_v35 = vmul.f32 %v774_v20, %v464_v11 }
 0x139   :  { %1567 = vst [vmem:[%s4417_s2 + $0xb18] sm:$0xff] %v1146_v21  ;;  %1568 = vst.msk [vmem:[%s4417_s2 + $0xb20] sm:$0xff] %vm1217_vm0, %v1147_v22  ;;  %v468_v18 = vld [vmem:[%s4416_s1 + $0xc68] sm:$0xff]  ;;  %v469_v19 = vld [vmem:[%s4416_s1 + $0xc70] sm:$0xff]  ;;  %v1190_v21 = vmul.f32 %v779_v16, %v470_v55  ;;  %v1191_v22 = vmul.f32 %v779_v16, %v471_v56  ;;  %v1192_v23 = vmul.f32 %v779_v16, %v472_v61 }
 0x13a   :  { %1583 = vst [vmem:[%s4417_s2 + $0xb98] sm:$0xff] %v1162_v29  ;;  %1584 = vst [vmem:[%s4417_s2 + $0xba0] sm:$0xff] %v1163_v30  ;;  %v1193_v24 = vmul.f32 %v779_v16, %v473_v62  ;;  %v484_v25 = vld [vmem:[%s4416_s1 + $0xce8] sm:$0xff]  ;;  %v485_v26 = vld [vmem:[%s4416_s1 + $0xcf0] sm:$0xff]  ;;  %v1194_v28 = vmul.f32 %v779_v16, %v474_v63  ;;  %v1195_v29 = vmul.f32 %v779_v16, %v475_v4 }
 0x13b   :  { %1585 = vst [vmem:[%s4417_s2 + $0xba8] sm:$0xff] %v1164_v31  ;;  %1586 = vst [vmem:[%s4417_s2 + $0xbb0] sm:$0xff] %v1165_v32  ;;  %v486_v27 = vld [vmem:[%s4416_s1 + $0xcf8] sm:$0xff]  ;;  %v1196_v30 = vmul.f32 %v779_v16, %v476_v5  ;;  %v1183_v31 = vmul.f32 %v774_v20, %v463_v6  ;;  %v487_v32 = vld [vmem:[%s4416_s1 + $0xd00] sm:$0xff]  ;;  %v1188_v42 = vmul.f32 %v774_v20, %v468_v18 }
 0x13c   :  { %1587 = vst [vmem:[%s4417_s2 + $0xbb8] sm:$0xff] %v1166_v36  ;;  %1588 = vst [vmem:[%s4417_s2 + $0xbc0] sm:$0xff] %v1167_v37  ;;  %v488_v33 = vld [vmem:[%s4416_s1 + $0xd08] sm:$0xff]  ;;  %v489_v34 = vld [vmem:[%s4416_s1 + $0xd10] sm:$0xff]  ;;  %v1185_v36 = vmul.f32 %v774_v20, %v465_v12  ;;  %v1186_v37 = vmul.f32 %v774_v20, %v466_v13 }
 0x13d   :  { %1589 = vst.msk [vmem:[%s4417_s2 + $0xbc8] sm:$0xff] %vm1217_vm0, %v1168_v38  ;;  %1576 = vst [vmem:[%s4417_s2 + $0xb60] sm:$0xff] %v1155_v39  ;;  %v1187_v38 = vmul.f32 %v774_v20, %v467_v17  ;;  %v490_v39 = vld [vmem:[%s4416_s1 + $0xd18] sm:$0xff]  ;;  %v477_v40 = vld [vmem:[%s4416_s1 + $0xcb0] sm:$0xff] }
 0x13e   :  { %1577 = vst [vmem:[%s4417_s2 + $0xb68] sm:$0xff] %v1156_v43  ;;  %1578 = vst [vmem:[%s4417_s2 + $0xb70] sm:$0xff] %v1157_v44  ;;  %v478_v41 = vld [vmem:[%s4416_s1 + $0xcb8] sm:$0xff]  ;;  %v1189_v43 = vmul.f32 %v774_v20, %v469_v19  ;;  %v789_v44 = vpop.permute.xlu1 %788  ;;  %v481_v47 = vld [vmem:[%s4416_s1 + $0xcd0] sm:$0xff] }
 0x13f   :  { %1579 = vst [vmem:[%s4417_s2 + $0xb78] sm:$0xff] %v1158_v45  ;;  %1580 = vst [vmem:[%s4417_s2 + $0xb80] sm:$0xff] %v1159_v46  ;;  %v479_v45 = vld [vmem:[%s4416_s1 + $0xcc0] sm:$0xff]  ;;  %v480_v46 = vld [vmem:[%s4416_s1 + $0xcc8] sm:$0xff]  ;;  %v1204_v49 = vmul.f32 %v789_v44, %v484_v25  ;;  %v1207_v52 = vmul.f32 %v789_v44, %v487_v32  ;;  %v1208_v55 = vmul.f32 %v789_v44, %v488_v33 }
 0x140   :  { %1581 = vst [vmem:[%s4417_s2 + $0xb88] sm:$0xff] %v1160_v50  ;;  %1582 = vst.msk [vmem:[%s4417_s2 + $0xb90] sm:$0xff] %vm1217_vm0, %v1161_v51  ;;  %v1205_v50 = vmul.f32 %v789_v44, %v485_v26  ;;  %v1206_v51 = vmul.f32 %v789_v44, %v486_v27  ;;  %v482_v53 = vld [vmem:[%s4416_s1 + $0xcd8] sm:$0xff]  ;;  %v483_v54 = vld [vmem:[%s4416_s1 + $0xce0] sm:$0xff]  ;;  %v1209_v56 = vmul.f32 %v789_v44, %v489_v34 }
 0x141   :  { %1597 = vst [vmem:[%s4417_s2 + $0xc08] sm:$0xff] %v1176_v57  ;;  %1598 = vst [vmem:[%s4417_s2 + $0xc10] sm:$0xff] %v1177_v58  ;;  %v1210_v57 = vmul.f32 %v789_v44, %v490_v39  ;;  %v1197_v58 = vmul.f32 %v784_v48, %v477_v40  ;;  %v1200_v61 = vmul.f32 %v784_v48, %v480_v46 }
 0x142   :  { %1599 = vst [vmem:[%s4417_s2 + $0xc18] sm:$0xff] %v1178_v59  ;;  %1600 = vst [vmem:[%s4417_s2 + $0xc20] sm:$0xff] %v1179_v60  ;;  %v1198_v59 = vmul.f32 %v784_v48, %v478_v41  ;;  %v1199_v60 = vmul.f32 %v784_v48, %v479_v45  ;;  %v1201_v62 = vmul.f32 %v784_v48, %v481_v47 }
 0x143   :  { %1601 = vst [vmem:[%s4417_s2 + $0xc28] sm:$0xff] %v1180_v0  ;;  %1602 = vst [vmem:[%s4417_s2 + $0xc30] sm:$0xff] %v1181_v1  ;;  %v1202_v63 = vmul.f32 %v784_v48, %v482_v53  ;;  %v1203_v0 = vmul.f32 %v784_v48, %v483_v54 }
 0x144   :  { %1603 = vst.msk [vmem:[%s4417_s2 + $0xc38] sm:$0xff] %vm1217_vm0, %v1182_v2  ;;  %1590 = vst [vmem:[%s4417_s2 + $0xbd0] sm:$0xff] %v1169_v3 }
 0x145   :  { %1591 = vst [vmem:[%s4417_s2 + $0xbd8] sm:$0xff] %v1170_v7  ;;  %1592 = vst [vmem:[%s4417_s2 + $0xbe0] sm:$0xff] %v1171_v8 }
 0x146   :  { %1593 = vst [vmem:[%s4417_s2 + $0xbe8] sm:$0xff] %v1172_v9  ;;  %1594 = vst [vmem:[%s4417_s2 + $0xbf0] sm:$0xff] %v1173_v10 }
 0x147   :  { %1595 = vst [vmem:[%s4417_s2 + $0xbf8] sm:$0xff] %v1174_v14  ;;  %1596 = vst.msk [vmem:[%s4417_s2 + $0xc00] sm:$0xff] %vm1217_vm0, %v1175_v15 }
 0x148   :  { %1611 = vst [vmem:[%s4417_s2 + $0xc78] sm:$0xff] %v1190_v21  ;;  %1612 = vst [vmem:[%s4417_s2 + $0xc80] sm:$0xff] %v1191_v22 }
 0x149   :  { %1613 = vst [vmem:[%s4417_s2 + $0xc88] sm:$0xff] %v1192_v23  ;;  %1614 = vst [vmem:[%s4417_s2 + $0xc90] sm:$0xff] %v1193_v24 }
 0x14a   :  { %1615 = vst [vmem:[%s4417_s2 + $0xc98] sm:$0xff] %v1194_v28  ;;  %1616 = vst [vmem:[%s4417_s2 + $0xca0] sm:$0xff] %v1195_v29 }
 0x14b   :  { %1617 = vst.msk [vmem:[%s4417_s2 + $0xca8] sm:$0xff] %vm1217_vm0, %v1196_v30  ;;  %1604 = vst [vmem:[%s4417_s2 + $0xc40] sm:$0xff] %v1183_v31 }
 0x14c   :  { %1605 = vst [vmem:[%s4417_s2 + $0xc48] sm:$0xff] %v1184_v35  ;;  %1606 = vst [vmem:[%s4417_s2 + $0xc50] sm:$0xff] %v1185_v36 }
 0x14d   :  { %1607 = vst [vmem:[%s4417_s2 + $0xc58] sm:$0xff] %v1186_v37  ;;  %1608 = vst [vmem:[%s4417_s2 + $0xc60] sm:$0xff] %v1187_v38 }
 0x14e   :  { %1609 = vst [vmem:[%s4417_s2 + $0xc68] sm:$0xff] %v1188_v42  ;;  %1610 = vst.msk [vmem:[%s4417_s2 + $0xc70] sm:$0xff] %vm1217_vm0, %v1189_v43 }
 0x14f   :  { %1625 = vst [vmem:[%s4417_s2 + $0xce8] sm:$0xff] %v1204_v49  ;;  %1626 = vst [vmem:[%s4417_s2 + $0xcf0] sm:$0xff] %v1205_v50 }
 0x150   :  { %1627 = vst [vmem:[%s4417_s2 + $0xcf8] sm:$0xff] %v1206_v51  ;;  %1628 = vst [vmem:[%s4417_s2 + $0xd00] sm:$0xff] %v1207_v52 }
 0x151   :  { %1629 = vst [vmem:[%s4417_s2 + $0xd08] sm:$0xff] %v1208_v55  ;;  %1630 = vst [vmem:[%s4417_s2 + $0xd10] sm:$0xff] %v1209_v56 }
 0x152   :  { %1631 = vst.msk [vmem:[%s4417_s2 + $0xd18] sm:$0xff] %vm1217_vm0, %v1210_v57  ;;  %1618 = vst [vmem:[%s4417_s2 + $0xcb0] sm:$0xff] %v1197_v58 }
 0x153   :  { %1619 = vst [vmem:[%s4417_s2 + $0xcb8] sm:$0xff] %v1198_v59  ;;  %1620 = vst [vmem:[%s4417_s2 + $0xcc0] sm:$0xff] %v1199_v60 }
 0x154   :  { %1621 = vst [vmem:[%s4417_s2 + $0xcc8] sm:$0xff] %v1200_v61  ;;  %1622 = vst [vmem:[%s4417_s2 + $0xcd0] sm:$0xff] %v1201_v62 }
 0x155   :  { %1623 = vst [vmem:[%s4417_s2 + $0xcd8] sm:$0xff] %v1202_v63  ;;  %1624 = vst.msk [vmem:[%s4417_s2 + $0xce0] sm:$0xff] %vm1217_vm0, %v1203_v0 }

</bundles_post_ra>
